<compile_context>
chip_gen: v7x
topology: tpu7x:2x2x1
jax: 0.10.0
libtpu: 0.0.40
codegen_flags: <defaults>
</compile_context>

<pallas_src>
import jax
import jax.numpy as jnp
import numpy as np
from jax.experimental import pallas as pl
from jax.experimental.pallas import tpu as pltpu


# ------------------------------- Pallas kernel --------------------------------

def _asff_kernel(lev_ref, top_ref, bot_ref,
                 wc_ref, bc_ref,       # compress_level_0 (folded BN): (Cin,Cin) bf16, (1,Cin) f32
                 ww_ref, bw_ref,       # 4 weight branches (folded BN): (4,Cin,8) bf16, (4,1,8) f32
                 wl_ref, bl_ref,       # weight_levels 1x1 conv:        (4,8,4) bf16, (1,4) f32
                 wexp_ref, bexp_ref,   # expand 3x3 conv (folded BN):   (9*Cin,Cout) bf16, (1,Cout) f32
                 out_ref,              # (1, TR, W, Cout) f32
                 pad_ref):             # VMEM scratch (TR+2, W+2, Cin) f32
    _, _, TR, W, Cin = lev_ref.shape
    Cout = out_ref.shape[3]
    r = pl.program_id(1)
    nrt = pl.num_programs(1)

    # Main row-tile plus the one-row halos delivered by the extra BlockSpecs.
    lv = jnp.concatenate([top_ref[0], lev_ref[0], bot_ref[0]], axis=1)  # (4, TR+2, W, Cin) bf16
    Pm = (TR + 2) * W
    x0 = lv[0].reshape(Pm, Cin)
    x1 = lv[1].reshape(Pm, Cin)
    x2 = lv[2].reshape(Pm, Cin)
    x3 = lv[3].reshape(Pm, Cin)

    # compress_level_0: 1x1 conv + folded BN + ReLU (bf16 MXU operands, f32 acc).
    l0c = jnp.maximum(
        jnp.dot(x0, wc_ref[...], preferred_element_type=jnp.float32) + bc_ref[...], 0.0)

    # Fusion logits without the (P,32) lane concat:
    #   logits = bl + sum_i  relu(x_i @ W_i + b_i) @ wl_i
    def branch(xb, i):
        wv = jnp.maximum(
            jnp.dot(xb, ww_ref[i], preferred_element_type=jnp.float32) + bw_ref[i], 0.0)
        return jnp.dot(wv.astype(jnp.bfloat16), wl_ref[i],
                       preferred_element_type=jnp.float32)

    logits = (bl_ref[...]
              + branch(l0c.astype(jnp.bfloat16), 0)
              + branch(x1, 1) + branch(x2, 2) + branch(x3, 3))          # (Pm, 4) f32

    # Softmax over the 4 fusion weights, kept on the VPU/EUP (no cross-lane reduce).
    g0 = logits[:, 0:1]
    g1 = logits[:, 1:2]
    g2 = logits[:, 2:3]
    g3 = logits[:, 3:4]
    m = jnp.maximum(jnp.maximum(g0, g1), jnp.maximum(g2, g3))
    e0 = jnp.exp(g0 - m)
    e1 = jnp.exp(g1 - m)
    e2 = jnp.exp(g2 - m)
    e3 = jnp.exp(g3 - m)
    inv = pl.reciprocal(e0 + e1 + e2 + e3)
    sw0 = e0 * inv
    sw1 = e1 * inv
    sw2 = e2 * inv
    sw3 = e3 * inv

    fused = (l0c * sw0
             + x1.astype(jnp.float32) * sw1
             + x2.astype(jnp.float32) * sw2
             + x3.astype(jnp.float32) * sw3)                            # (Pm, Cin) f32

    # Padded fused tile in a persistent VMEM scratch (W zero-padding via concat,
    # row halos zeroed with pl.when when this tile touches an image border).
    fused3d = fused.reshape(TR + 2, W, Cin)
    zc = jnp.zeros((TR + 2, 1, Cin), jnp.float32)
    pad_ref[...] = jnp.concatenate([zc, fused3d, zc], axis=1)           # (TR+2, W+2, Cin)

    @pl.when(r == 0)
    def _():
        pad_ref[0:1, :, :] = jnp.zeros((1, W + 2, Cin), pad_ref.dtype)

    @pl.when(r == nrt - 1)
    def _():
        pad_ref[TR + 1:TR + 2, :, :] = jnp.zeros((1, W + 2, Cin), pad_ref.dtype)

    # expand: 3x3 conv + folded BN + ReLU as ONE im2col matmul (K = 9*Cin).
    P = TR * W
    pad = pad_ref[...]
    patches = jnp.concatenate(
        [pad[ky:ky + TR, kx:kx + W, :].reshape(P, Cin)
         for ky in range(3) for kx in range(3)], axis=-1).astype(jnp.bfloat16)  # (P, 9*Cin)
    acc = jnp.dot(patches, wexp_ref[...], preferred_element_type=jnp.float32)
    out = jnp.maximum(acc + bexp_ref[...], 0.0)
    out_ref[0] = out.reshape(TR, W, Cout).astype(out_ref.dtype)


# --------------------------------- wrapper -------------------------------------

def _largest_divisor_leq(n, cap):
    cap = max(1, min(n, cap))
    for t in range(cap, 0, -1):
        if n % t == 0:
            return t
    return 1


def nearest_resize_nchw_to_nhwc(x, out_h, out_w):
    """PyTorch-style nearest resize of an NCHW tensor, returned as NHWC float32."""
    _, _, h, w = x.shape
    if (h, w) != (out_h, out_w):
        iy = (jnp.arange(out_h) * h) // out_h
        ix = (jnp.arange(out_w) * w) // out_w
        x = x[:, :, iy][:, :, :, ix]
    return jnp.transpose(x, (0, 2, 3, 1)).astype(jnp.float32)


def prepare_levels(x0, x1, x2, x3, in_size):
    """Resize all pyramid levels to (H/4, W/4) and stack to (N, 4, H, W, C) bf16."""
    H4, W4 = in_size[0] // 4, in_size[1] // 4
    ls = [nearest_resize_nchw_to_nhwc(x, H4, W4) for x in (x0, x1, x2, x3)]
    return jnp.stack(ls, axis=1).astype(jnp.bfloat16)


def asff_pallas(levels, params, out_channel, row_tile=32):
    N, L, H, W, Cin = levels.shape
    assert L == 4
    Cout = out_channel
    wc, bc, ww, bw, wl, bl, wexp, bexp = params

    TR = _largest_divisor_leq(H, row_tile)
    R = H // TR

    # bf16 MXU operands; biases stay f32.
    wc_b = wc.astype(jnp.bfloat16)                      # (Cin, Cin)
    ww_b = ww.astype(jnp.bfloat16)                      # (4, Cin, 8)
    wl_b = wl.reshape(4, 8, 4).astype(jnp.bfloat16)     # (4, 8, 4)
    wexp_b = wexp.reshape(-1, Cout).astype(jnp.bfloat16)  # (9*Cin, Cout)

    def lev_map(n, r):
        return (n, 0, r, 0, 0)

    def top_map(n, r):                                  # one-row halo above (clamped)
        return (n, 0, jnp.maximum(r * TR - 1, 0), 0, 0)

    def bot_map(n, r):                                  # one-row halo below (clamped)
        return (n, 0, jnp.minimum(r * TR + TR, H - 1), 0, 0)

    def const_map(rank):
        return lambda n, r: (0,) * rank

    # Advisory cost estimate for the XLA scheduler.
    flops = 2 * N * H * W * (Cin * Cin + 4 * Cin * 8 + 32 * 4 + 9 * Cin * Cout)
    bytes_accessed = int(levels.size * 2 + N * H * W * Cout * 4
                         + (wc_b.size + ww_b.size + wl_b.size + wexp_b.size) * 2
                         + (bc.size + bw.size + bl.size + bexp.size) * 4)

    # VMEM limit sized from the tile (with headroom), clamped under v7x's 64 MiB.
    tile_in = 3 * 4 * (TR + 2) * W * Cin * 2
    tile_out = TR * W * Cout * 4
    weight_b = ((wc_b.size + ww_b.size + wl_b.size + wexp_b.size) * 2
                + (bc.size + bw.size + bl.size + bexp.size) * 4)
    scratch_b = (TR + 2) * (W + 2) * Cin * 4
    patches_b = TR * W * 9 * Cin * 2
    vmem_limit = int(min(56 * 2 ** 20,
                         max(32 * 2 ** 20,
                             4 * (2 * (tile_in + tile_out) + weight_b + scratch_b + patches_b))))

    out_nhwc = pl.pallas_call(
        _asff_kernel,
        out_shape=jax.ShapeDtypeStruct((N, H, W, Cout), jnp.float32),
        grid=(N, R),
        in_specs=[
            pl.BlockSpec((1, 4, TR, W, Cin), lev_map),
            pl.BlockSpec((1, 4, 1, W, Cin), top_map),
            pl.BlockSpec((1, 4, 1, W, Cin), bot_map),
            pl.BlockSpec(wc_b.shape, const_map(2)),
            pl.BlockSpec(bc.shape, const_map(2)),
            pl.BlockSpec(ww_b.shape, const_map(3)),
            pl.BlockSpec(bw.shape, const_map(3)),
            pl.BlockSpec(wl_b.shape, const_map(3)),
            pl.BlockSpec(bl.shape, const_map(2)),
            pl.BlockSpec(wexp_b.shape, const_map(2)),
            pl.BlockSpec(bexp.shape, const_map(2)),
        ],
        out_specs=pl.BlockSpec((1, TR, W, Cout), lambda n, r: (n, r, 0, 0)),
        scratch_shapes=[pltpu.VMEM((TR + 2, W + 2, Cin), jnp.float32)],
        compiler_params=pltpu.CompilerParams(
            dimension_semantics=("parallel", "parallel"),
            vmem_limit_bytes=vmem_limit),
        cost_estimate=pl.CostEstimate(flops=flops,
                                      transcendentals=4 * N * H * W,
                                      bytes_accessed=bytes_accessed),
    )(levels, levels, levels,
      wc_b, bc, ww_b, bw, wl_b, bl, wexp_b, bexp)

    return jnp.transpose(out_nhwc, (0, 3, 1, 2))   # NCHW, matching the PyTorch module


# ----------------------- deterministic parameter setup ------------------------

def make_conv_bn_folded(key, cout, cin, k, eps=1e-5):
    k1, k2, k3, k4, k5 = jax.random.split(key, 5)
    w = 0.2 * jax.random.normal(k1, (cout, cin, k, k), jnp.float32)
    gamma = 1.0 + 0.1 * jax.random.normal(k2, (cout,), jnp.float32)
    beta = 0.1 * jax.random.normal(k3, (cout,), jnp.float32)
    mean = 0.1 * jax.random.normal(k4, (cout,), jnp.float32)
    var = jax.random.uniform(k5, (cout,), jnp.float32, 0.5, 1.5)
    scale = gamma / jnp.sqrt(var + eps)
    return w * scale[:, None, None, None], beta - mean * scale


def build_params(key, cin, cout, compress_c=8):
    keys = jax.random.split(key, 8)
    # compress_level_0 (1x1)
    wcf, bcf = make_conv_bn_folded(keys[0], cin, cin, 1)
    wc = jnp.transpose(wcf[:, :, 0, 0], (1, 0))                   # (Cin, Cin)
    bc = bcf.reshape(1, cin)
    # four weight branches (1x1 -> 8)
    wws, bws = [], []
    for i in range(4):
        wf, bf = make_conv_bn_folded(keys[1 + i], compress_c, cin, 1)
        wws.append(jnp.transpose(wf[:, :, 0, 0], (1, 0)))         # (Cin, 8)
        bws.append(bf.reshape(1, compress_c))
    ww = jnp.stack(wws, 0)                                        # (4, Cin, 8)
    bw = jnp.stack(bws, 0)                                        # (4, 1, 8)
    # weight_levels plain 1x1 conv with bias (no BN)
    wlc = 0.2 * jax.random.normal(keys[5], (4, 4 * compress_c, 1, 1), jnp.float32)
    blc = 0.1 * jax.random.normal(keys[6], (4,), jnp.float32)
    wl = jnp.transpose(wlc[:, :, 0, 0], (1, 0))                   # (32, 4)
    bl = blc.reshape(1, 4)
    # expand (3x3)
    wef, bef = make_conv_bn_folded(keys[7], cout, cin, 3)
    wexp = jnp.stack([jnp.transpose(wef[:, :, ky, kx], (1, 0))
                      for ky in range(3) for kx in range(3)], 0)   # (9, Cin, Cout)
    bexp = bef.reshape(1, cout)
    return wc, bc, ww, bw, wl, bl, wexp, bexp


# ------------------------------ pure-JAX reference -----------------------------

def asff_ref(levels, params):
    """Reference on the stacked bf16 levels; matmuls use bf16 operands / f32 acc
    to match the kernel's MXU precision choice."""
    wc, bc, ww, bw, wl, bl, wexp, bexp = params

    def mm(x, w):
        return jnp.einsum('...c,cd->...d', x.astype(jnp.bfloat16), w.astype(jnp.bfloat16),
                          preferred_element_type=jnp.float32)

    lv = levels.astype(jnp.float32)
    l0, l1, l2, l3 = lv[:, 0], lv[:, 1], lv[:, 2], lv[:, 3]
    l0c = jax.nn.relu(mm(l0, wc) + bc[0])
    xs = [l0c, l1, l2, l3]
    wv = jnp.concatenate(
        [jax.nn.relu(mm(xs[i], ww[i]) + bw[i, 0]) for i in range(4)], axis=-1)
    logits = mm(wv, wl) + bl[0]
    sw = jax.nn.softmax(logits, axis=-1)
    fused = sum(xs[i] * sw[..., i:i + 1] for i in range(4))
    pad = jnp.pad(fused, ((0, 0), (1, 1), (1, 1), (0, 0)))
    H, W = fused.shape[1], fused.shape[2]
    acc = 0.0
    for ky in range(3):
        for kx in range(3):
            acc = acc + mm(pad[:, ky:ky + H, kx:kx + W, :], wexp[ky * 3 + kx])
    return jax.nn.relu(acc + bexp[0])


if __name__ == "__main__":
    key = jax.random.PRNGKey(0)
    kx0, kx1, kx2, kx3, kp = jax.random.split(key, 5)

    N, Cin, Cout = 2, 4, 8
    in_size = (32, 32)          # ASFF target size -> fused at (8, 8)

    # NCHW inputs at the usual pyramid scales
    x_level_0 = jax.random.normal(kx0, (N, Cin, 2, 2), jnp.float32)
    x_level_1 = jax.random.normal(kx1, (N, Cin, 4, 4), jnp.float32)
    x_level_2 = jax.random.normal(kx2, (N, Cin, 8, 8), jnp.float32)
    x_level_3 = jax.random.normal(kx3, (N, Cin, 8, 8), jnp.float32)

    params = build_params(kp, Cin, Cout)
    levels = prepare_levels(x_level_0, x_level_1, x_level_2, x_level_3, in_size)

    # row_tile=4 -> 2 row tiles per image: exercises the halo / border-zeroing path.
    out_nchw = asff_pallas(levels, params, Cout, row_tile=4)
    out_nchw = jax.block_until_ready(out_nchw)

    ref_nchw = jnp.transpose(asff_ref(levels, params), (0, 3, 1, 2))
    np.testing.assert_allclose(np.asarray(out_nchw), np.asarray(ref_nchw),
                               rtol=1e-4, atol=1e-4)
    assert out_nchw.shape == (N, Cout, in_size[0] // 4, in_size[1] // 4)
    print("KERNEL_OK")
</pallas_src>

<mosaic_0001>
module attributes {stable_mosaic.version = 11 : i64} {
  func.func @_asff_kernel(%arg0: i32, %arg1: i32, %arg2: memref<1x4x4x8x4xbf16, #tpu.memory_space<vmem>>, %arg3: memref<1x4x1x8x4xbf16, #tpu.memory_space<vmem>>, %arg4: memref<1x4x1x8x4xbf16, #tpu.memory_space<vmem>>, %arg5: memref<4x4xbf16, #tpu.memory_space<vmem>>, %arg6: memref<1x4xf32, #tpu.memory_space<vmem>>, %arg7: memref<4x4x8xbf16, #tpu.memory_space<vmem>>, %arg8: memref<4x1x8xf32, #tpu.memory_space<vmem>>, %arg9: memref<4x8x4xbf16, #tpu.memory_space<vmem>>, %arg10: memref<1x4xf32, #tpu.memory_space<vmem>>, %arg11: memref<36x8xbf16, #tpu.memory_space<vmem>>, %arg12: memref<1x8xf32, #tpu.memory_space<vmem>>, %arg13: memref<1x4x8x8xf32, #tpu.memory_space<vmem>>, %arg14: memref<6x10x4xf32, #tpu.memory_space<vmem>>) attributes {dimension_semantics = [#tpu.dimension_semantics<parallel>, #tpu.dimension_semantics<parallel>], iteration_bounds = array<i64: 2, 2>, scalar_prefetch = 0 : i64, scratch_operands = 1 : i64, tpu.core_type = #tpu.core_type<tc>, window_params = [{transform_indices = @transform_0, window_bounds = array<i64: 1, 4, 4, 8, 4>}, {transform_indices = @transform_1, window_bounds = array<i64: 1, 4, 1, 8, 4>}, {transform_indices = @transform_2, window_bounds = array<i64: 1, 4, 1, 8, 4>}, {pipeline_mode = #tpu.pipeline_mode<synchronous>, transform_indices = @transform_3, window_bounds = array<i64: 4, 4>}, {pipeline_mode = #tpu.pipeline_mode<synchronous>, transform_indices = @transform_4, window_bounds = array<i64: 1, 4>}, {pipeline_mode = #tpu.pipeline_mode<synchronous>, transform_indices = @transform_5, window_bounds = array<i64: 4, 4, 8>}, {pipeline_mode = #tpu.pipeline_mode<synchronous>, transform_indices = @transform_6, window_bounds = array<i64: 4, 1, 8>}, {pipeline_mode = #tpu.pipeline_mode<synchronous>, transform_indices = @transform_7, window_bounds = array<i64: 4, 8, 4>}, {pipeline_mode = #tpu.pipeline_mode<synchronous>, transform_indices = @transform_8, window_bounds = array<i64: 1, 4>}, {pipeline_mode = #tpu.pipeline_mode<synchronous>, transform_indices = @transform_9, window_bounds = array<i64: 36, 8>}, {pipeline_mode = #tpu.pipeline_mode<synchronous>, transform_indices = @transform_10, window_bounds = array<i64: 1, 8>}, {transform_indices = @transform_11, window_bounds = array<i64: 1, 4, 8, 8>}]} {
    %c0 = arith.constant 0 : index
    %c0_0 = arith.constant 0 : index
    %c0_1 = arith.constant 0 : index
    %c0_2 = arith.constant 0 : index
    %c0_3 = arith.constant 0 : index
    %0 = vector.load %arg3[%c0, %c0_0, %c0_1, %c0_2, %c0_3] : memref<1x4x1x8x4xbf16, #tpu.memory_space<vmem>>, vector<1x4x1x8x4xbf16>
    %1 = vector.shape_cast %0 : vector<1x4x1x8x4xbf16> to vector<4x1x8x4xbf16>
    %c0_4 = arith.constant 0 : index
    %c0_5 = arith.constant 0 : index
    %c0_6 = arith.constant 0 : index
    %c0_7 = arith.constant 0 : index
    %c0_8 = arith.constant 0 : index
    %2 = vector.load %arg2[%c0_4, %c0_5, %c0_6, %c0_7, %c0_8] : memref<1x4x4x8x4xbf16, #tpu.memory_space<vmem>>, vector<1x4x4x8x4xbf16>
    %3 = vector.shape_cast %2 : vector<1x4x4x8x4xbf16> to vector<4x4x8x4xbf16>
    %c0_9 = arith.constant 0 : index
    %c0_10 = arith.constant 0 : index
    %c0_11 = arith.constant 0 : index
    %c0_12 = arith.constant 0 : index
    %c0_13 = arith.constant 0 : index
    %4 = vector.load %arg4[%c0_9, %c0_10, %c0_11, %c0_12, %c0_13] : memref<1x4x1x8x4xbf16, #tpu.memory_space<vmem>>, vector<1x4x1x8x4xbf16>
    %5 = vector.shape_cast %4 : vector<1x4x1x8x4xbf16> to vector<4x1x8x4xbf16>
    %6 = tpu.concatenate %1, %3, %5 in 1 : vector<4x1x8x4xbf16>, vector<4x4x8x4xbf16>, vector<4x1x8x4xbf16> -> vector<4x6x8x4xbf16>
    %7 = vector.extract_strided_slice %6 {offsets = [0, 0, 0, 0], sizes = [1, 6, 8, 4], strides = [1, 1, 1, 1]} : vector<4x6x8x4xbf16> to vector<1x6x8x4xbf16>
    %8 = vector.shape_cast %7 : vector<1x6x8x4xbf16> to vector<6x8x4xbf16>
    %9 = vector.shape_cast %8 : vector<6x8x4xbf16> to vector<48x4xbf16>
    %10 = vector.extract_strided_slice %6 {offsets = [1, 0, 0, 0], sizes = [1, 6, 8, 4], strides = [1, 1, 1, 1]} : vector<4x6x8x4xbf16> to vector<1x6x8x4xbf16>
    %11 = vector.shape_cast %10 : vector<1x6x8x4xbf16> to vector<6x8x4xbf16>
    %12 = vector.shape_cast %11 : vector<6x8x4xbf16> to vector<48x4xbf16>
    %13 = vector.extract_strided_slice %6 {offsets = [2, 0, 0, 0], sizes = [1, 6, 8, 4], strides = [1, 1, 1, 1]} : vector<4x6x8x4xbf16> to vector<1x6x8x4xbf16>
    %14 = vector.shape_cast %13 : vector<1x6x8x4xbf16> to vector<6x8x4xbf16>
    %15 = vector.shape_cast %14 : vector<6x8x4xbf16> to vector<48x4xbf16>
    %16 = vector.extract_strided_slice %6 {offsets = [3, 0, 0, 0], sizes = [1, 6, 8, 4], strides = [1, 1, 1, 1]} : vector<4x6x8x4xbf16> to vector<1x6x8x4xbf16>
    %17 = vector.shape_cast %16 : vector<1x6x8x4xbf16> to vector<6x8x4xbf16>
    %18 = vector.shape_cast %17 : vector<6x8x4xbf16> to vector<48x4xbf16>
    %c0_14 = arith.constant 0 : index
    %c0_15 = arith.constant 0 : index
    %19 = vector.load %arg5[%c0_14, %c0_15] : memref<4x4xbf16, #tpu.memory_space<vmem>>, vector<4x4xbf16>
    %cst = arith.constant dense<0.000000e+00> : vector<48x4xf32>
    %20 = tpu.matmul %9, %19, %cst {dimension_numbers = #tpu.dot_dimension_numbers<[1], [0], [0], [1], [0, 0, 1, 1], [], []>} : vector<48x4xbf16>, vector<4x4xbf16>, vector<48x4xf32> -> vector<48x4xf32>
    %c0_16 = arith.constant 0 : index
    %c0_17 = arith.constant 0 : index
    %21 = vector.load %arg6[%c0_16, %c0_17] : memref<1x4xf32, #tpu.memory_space<vmem>>, vector<1x4xf32>
    %22 = vector.broadcast %21 : vector<1x4xf32> to vector<48x4xf32>
    %23 = arith.addf %20, %22 : vector<48x4xf32>
    %cst_18 = arith.constant 0.000000e+00 : f32
    %24 = vector.broadcast %cst_18 : f32 to vector<48x4xf32>
    %25 = arith.maximumf %23, %24 : vector<48x4xf32>
    %c0_19 = arith.constant 0 : index
    %c0_20 = arith.constant 0 : index
    %26 = vector.load %arg10[%c0_19, %c0_20] : memref<1x4xf32, #tpu.memory_space<vmem>>, vector<1x4xf32>
    %27 = arith.truncf %25 : vector<48x4xf32> to vector<48x4xbf16>
    %c0_21 = arith.constant 0 : index
    %c0_22 = arith.constant 0 : index
    %c0_23 = arith.constant 0 : index
    %28 = vector.load %arg7[%c0_21, %c0_22, %c0_23] : memref<4x4x8xbf16, #tpu.memory_space<vmem>>, vector<1x4x8xbf16>
    %29 = vector.shape_cast %28 : vector<1x4x8xbf16> to vector<4x8xbf16>
    %cst_24 = arith.constant dense<0.000000e+00> : vector<48x8xf32>
    %30 = tpu.matmul %27, %29, %cst_24 {dimension_numbers = #tpu.dot_dimension_numbers<[1], [0], [0], [1], [0, 0, 1, 1], [], []>} : vector<48x4xbf16>, vector<4x8xbf16>, vector<48x8xf32> -> vector<48x8xf32>
    %c0_25 = arith.constant 0 : index
    %c0_26 = arith.constant 0 : index
    %c0_27 = arith.constant 0 : index
    %31 = vector.load %arg8[%c0_25, %c0_26, %c0_27] : memref<4x1x8xf32, #tpu.memory_space<vmem>>, vector<1x1x8xf32>
    %32 = vector.shape_cast %31 : vector<1x1x8xf32> to vector<1x8xf32>
    %33 = vector.broadcast %32 : vector<1x8xf32> to vector<48x8xf32>
    %34 = arith.addf %30, %33 : vector<48x8xf32>
    %cst_28 = arith.constant 0.000000e+00 : f32
    %35 = vector.broadcast %cst_28 : f32 to vector<48x8xf32>
    %36 = arith.maximumf %34, %35 : vector<48x8xf32>
    %37 = arith.truncf %36 : vector<48x8xf32> to vector<48x8xbf16>
    %c0_29 = arith.constant 0 : index
    %c0_30 = arith.constant 0 : index
    %c0_31 = arith.constant 0 : index
    %38 = vector.load %arg9[%c0_29, %c0_30, %c0_31] : memref<4x8x4xbf16, #tpu.memory_space<vmem>>, vector<1x8x4xbf16>
    %39 = vector.shape_cast %38 : vector<1x8x4xbf16> to vector<8x4xbf16>
    %cst_32 = arith.constant dense<0.000000e+00> : vector<48x4xf32>
    %40 = tpu.matmul %37, %39, %cst_32 {dimension_numbers = #tpu.dot_dimension_numbers<[1], [0], [0], [1], [0, 0, 1, 1], [], []>} : vector<48x8xbf16>, vector<8x4xbf16>, vector<48x4xf32> -> vector<48x4xf32>
    %41 = vector.broadcast %26 : vector<1x4xf32> to vector<48x4xf32>
    %42 = arith.addf %41, %40 : vector<48x4xf32>
    %c1 = arith.constant 1 : index
    %c0_33 = arith.constant 0 : index
    %c0_34 = arith.constant 0 : index
    %43 = vector.load %arg7[%c1, %c0_33, %c0_34] : memref<4x4x8xbf16, #tpu.memory_space<vmem>>, vector<1x4x8xbf16>
    %44 = vector.shape_cast %43 : vector<1x4x8xbf16> to vector<4x8xbf16>
    %cst_35 = arith.constant dense<0.000000e+00> : vector<48x8xf32>
    %45 = tpu.matmul %12, %44, %cst_35 {dimension_numbers = #tpu.dot_dimension_numbers<[1], [0], [0], [1], [0, 0, 1, 1], [], []>} : vector<48x4xbf16>, vector<4x8xbf16>, vector<48x8xf32> -> vector<48x8xf32>
    %c1_36 = arith.constant 1 : index
    %c0_37 = arith.constant 0 : index
    %c0_38 = arith.constant 0 : index
    %46 = vector.load %arg8[%c1_36, %c0_37, %c0_38] : memref<4x1x8xf32, #tpu.memory_space<vmem>>, vector<1x1x8xf32>
    %47 = vector.shape_cast %46 : vector<1x1x8xf32> to vector<1x8xf32>
    %48 = vector.broadcast %47 : vector<1x8xf32> to vector<48x8xf32>
    %49 = arith.addf %45, %48 : vector<48x8xf32>
    %cst_39 = arith.constant 0.000000e+00 : f32
    %50 = vector.broadcast %cst_39 : f32 to vector<48x8xf32>
    %51 = arith.maximumf %49, %50 : vector<48x8xf32>
    %52 = arith.truncf %51 : vector<48x8xf32> to vector<48x8xbf16>
    %c1_40 = arith.constant 1 : index
    %c0_41 = arith.constant 0 : index
    %c0_42 = arith.constant 0 : index
    %53 = vector.load %arg9[%c1_40, %c0_41, %c0_42] : memref<4x8x4xbf16, #tpu.memory_space<vmem>>, vector<1x8x4xbf16>
    %54 = vector.shape_cast %53 : vector<1x8x4xbf16> to vector<8x4xbf16>
    %cst_43 = arith.constant dense<0.000000e+00> : vector<48x4xf32>
    %55 = tpu.matmul %52, %54, %cst_43 {dimension_numbers = #tpu.dot_dimension_numbers<[1], [0], [0], [1], [0, 0, 1, 1], [], []>} : vector<48x8xbf16>, vector<8x4xbf16>, vector<48x4xf32> -> vector<48x4xf32>
    %56 = arith.addf %42, %55 : vector<48x4xf32>
    %c2 = arith.constant 2 : index
    %c0_44 = arith.constant 0 : index
    %c0_45 = arith.constant 0 : index
    %57 = vector.load %arg7[%c2, %c0_44, %c0_45] : memref<4x4x8xbf16, #tpu.memory_space<vmem>>, vector<1x4x8xbf16>
    %58 = vector.shape_cast %57 : vector<1x4x8xbf16> to vector<4x8xbf16>
    %cst_46 = arith.constant dense<0.000000e+00> : vector<48x8xf32>
    %59 = tpu.matmul %15, %58, %cst_46 {dimension_numbers = #tpu.dot_dimension_numbers<[1], [0], [0], [1], [0, 0, 1, 1], [], []>} : vector<48x4xbf16>, vector<4x8xbf16>, vector<48x8xf32> -> vector<48x8xf32>
    %c2_47 = arith.constant 2 : index
    %c0_48 = arith.constant 0 : index
    %c0_49 = arith.constant 0 : index
    %60 = vector.load %arg8[%c2_47, %c0_48, %c0_49] : memref<4x1x8xf32, #tpu.memory_space<vmem>>, vector<1x1x8xf32>
    %61 = vector.shape_cast %60 : vector<1x1x8xf32> to vector<1x8xf32>
    %62 = vector.broadcast %61 : vector<1x8xf32> to vector<48x8xf32>
    %63 = arith.addf %59, %62 : vector<48x8xf32>
    %cst_50 = arith.constant 0.000000e+00 : f32
    %64 = vector.broadcast %cst_50 : f32 to vector<48x8xf32>
    %65 = arith.maximumf %63, %64 : vector<48x8xf32>
    %66 = arith.truncf %65 : vector<48x8xf32> to vector<48x8xbf16>
    %c2_51 = arith.constant 2 : index
    %c0_52 = arith.constant 0 : index
    %c0_53 = arith.constant 0 : index
    %67 = vector.load %arg9[%c2_51, %c0_52, %c0_53] : memref<4x8x4xbf16, #tpu.memory_space<vmem>>, vector<1x8x4xbf16>
    %68 = vector.shape_cast %67 : vector<1x8x4xbf16> to vector<8x4xbf16>
    %cst_54 = arith.constant dense<0.000000e+00> : vector<48x4xf32>
    %69 = tpu.matmul %66, %68, %cst_54 {dimension_numbers = #tpu.dot_dimension_numbers<[1], [0], [0], [1], [0, 0, 1, 1], [], []>} : vector<48x8xbf16>, vector<8x4xbf16>, vector<48x4xf32> -> vector<48x4xf32>
    %70 = arith.addf %56, %69 : vector<48x4xf32>
    %c3 = arith.constant 3 : index
    %c0_55 = arith.constant 0 : index
    %c0_56 = arith.constant 0 : index
    %71 = vector.load %arg7[%c3, %c0_55, %c0_56] : memref<4x4x8xbf16, #tpu.memory_space<vmem>>, vector<1x4x8xbf16>
    %72 = vector.shape_cast %71 : vector<1x4x8xbf16> to vector<4x8xbf16>
    %cst_57 = arith.constant dense<0.000000e+00> : vector<48x8xf32>
    %73 = tpu.matmul %18, %72, %cst_57 {dimension_numbers = #tpu.dot_dimension_numbers<[1], [0], [0], [1], [0, 0, 1, 1], [], []>} : vector<48x4xbf16>, vector<4x8xbf16>, vector<48x8xf32> -> vector<48x8xf32>
    %c3_58 = arith.constant 3 : index
    %c0_59 = arith.constant 0 : index
    %c0_60 = arith.constant 0 : index
    %74 = vector.load %arg8[%c3_58, %c0_59, %c0_60] : memref<4x1x8xf32, #tpu.memory_space<vmem>>, vector<1x1x8xf32>
    %75 = vector.shape_cast %74 : vector<1x1x8xf32> to vector<1x8xf32>
    %76 = vector.broadcast %75 : vector<1x8xf32> to vector<48x8xf32>
    %77 = arith.addf %73, %76 : vector<48x8xf32>
    %cst_61 = arith.constant 0.000000e+00 : f32
    %78 = vector.broadcast %cst_61 : f32 to vector<48x8xf32>
    %79 = arith.maximumf %77, %78 : vector<48x8xf32>
    %80 = arith.truncf %79 : vector<48x8xf32> to vector<48x8xbf16>
    %c3_62 = arith.constant 3 : index
    %c0_63 = arith.constant 0 : index
    %c0_64 = arith.constant 0 : index
    %81 = vector.load %arg9[%c3_62, %c0_63, %c0_64] : memref<4x8x4xbf16, #tpu.memory_space<vmem>>, vector<1x8x4xbf16>
    %82 = vector.shape_cast %81 : vector<1x8x4xbf16> to vector<8x4xbf16>
    %cst_65 = arith.constant dense<0.000000e+00> : vector<48x4xf32>
    %83 = tpu.matmul %80, %82, %cst_65 {dimension_numbers = #tpu.dot_dimension_numbers<[1], [0], [0], [1], [0, 0, 1, 1], [], []>} : vector<48x8xbf16>, vector<8x4xbf16>, vector<48x4xf32> -> vector<48x4xf32>
    %84 = arith.addf %70, %83 : vector<48x4xf32>
    %85 = vector.extract_strided_slice %84 {offsets = [0, 0], sizes = [48, 1], strides = [1, 1]} : vector<48x4xf32> to vector<48x1xf32>
    %86 = vector.extract_strided_slice %84 {offsets = [0, 1], sizes = [48, 1], strides = [1, 1]} : vector<48x4xf32> to vector<48x1xf32>
    %87 = vector.extract_strided_slice %84 {offsets = [0, 2], sizes = [48, 1], strides = [1, 1]} : vector<48x4xf32> to vector<48x1xf32>
    %88 = vector.extract_strided_slice %84 {offsets = [0, 3], sizes = [48, 1], strides = [1, 1]} : vector<48x4xf32> to vector<48x1xf32>
    %89 = arith.maximumf %85, %86 : vector<48x1xf32>
    %90 = arith.maximumf %87, %88 : vector<48x1xf32>
    %91 = arith.maximumf %89, %90 : vector<48x1xf32>
    %92 = arith.subf %85, %91 : vector<48x1xf32>
    %93 = math.exp %92 : vector<48x1xf32>
    %94 = arith.subf %86, %91 : vector<48x1xf32>
    %95 = math.exp %94 : vector<48x1xf32>
    %96 = arith.subf %87, %91 : vector<48x1xf32>
    %97 = math.exp %96 : vector<48x1xf32>
    %98 = arith.subf %88, %91 : vector<48x1xf32>
    %99 = math.exp %98 : vector<48x1xf32>
    %100 = arith.addf %93, %95 : vector<48x1xf32>
    %101 = arith.addf %100, %97 : vector<48x1xf32>
    %102 = arith.addf %101, %99 : vector<48x1xf32>
    %103 = tpu.reciprocal %102 : vector<48x1xf32> -> vector<48x1xf32>
    %104 = arith.mulf %93, %103 : vector<48x1xf32>
    %105 = arith.mulf %95, %103 : vector<48x1xf32>
    %106 = arith.mulf %97, %103 : vector<48x1xf32>
    %107 = arith.mulf %99, %103 : vector<48x1xf32>
    %108 = vector.broadcast %104 : vector<48x1xf32> to vector<48x4xf32>
    %109 = arith.mulf %25, %108 : vector<48x4xf32>
    %110 = arith.extf %12 : vector<48x4xbf16> to vector<48x4xf32>
    %111 = vector.broadcast %105 : vector<48x1xf32> to vector<48x4xf32>
    %112 = arith.mulf %110, %111 : vector<48x4xf32>
    %113 = arith.addf %109, %112 : vector<48x4xf32>
    %114 = arith.extf %15 : vector<48x4xbf16> to vector<48x4xf32>
    %115 = vector.broadcast %106 : vector<48x1xf32> to vector<48x4xf32>
    %116 = arith.mulf %114, %115 : vector<48x4xf32>
    %117 = arith.addf %113, %116 : vector<48x4xf32>
    %118 = arith.extf %18 : vector<48x4xbf16> to vector<48x4xf32>
    %119 = vector.broadcast %107 : vector<48x1xf32> to vector<48x4xf32>
    %120 = arith.mulf %118, %119 : vector<48x4xf32>
    %121 = arith.addf %117, %120 : vector<48x4xf32>
    %122 = vector.shape_cast %121 : vector<48x4xf32> to vector<6x8x4xf32>
    %cst_66 = arith.constant 0.000000e+00 : f32
    %123 = vector.broadcast %cst_66 : f32 to vector<6x1x4xf32>
    %124 = tpu.concatenate %123, %122, %123 in 1 : vector<6x1x4xf32>, vector<6x8x4xf32>, vector<6x1x4xf32> -> vector<6x10x4xf32>
    %c0_67 = arith.constant 0 : index
    %c0_68 = arith.constant 0 : index
    %c0_69 = arith.constant 0 : index
    %125 = vector.load %arg14[%c0_67, %c0_68, %c0_69] : memref<6x10x4xf32, #tpu.memory_space<vmem>>, vector<6x10x4xf32>
    tpu.vector_store %arg14[%c0_67, %c0_68, %c0_69], %124 {strides = array<i32>} : memref<6x10x4xf32, #tpu.memory_space<vmem>>, vector<6x10x4xf32>,
    %c0_i32 = arith.constant 0 : i32
    %126 = arith.cmpi eq, %arg1, %c0_i32 : i32
    %127 = arith.extui %126 : i1 to i32
    %c0_i32_70 = arith.constant 0 : i32
    %128 = arith.cmpi ne, %127, %c0_i32_70 : i32
    scf.if %128 {
      %cst_85 = arith.constant 0.000000e+00 : f32
      %164 = vector.broadcast %cst_85 : f32 to vector<1x10x4xf32>
      %c0_86 = arith.constant 0 : index
      %c0_87 = arith.constant 0 : index
      %c0_88 = arith.constant 0 : index
      %165 = vector.load %arg14[%c0_86, %c0_87, %c0_88] : memref<6x10x4xf32, #tpu.memory_space<vmem>>, vector<1x10x4xf32>
      tpu.vector_store %arg14[%c0_86, %c0_87, %c0_88], %164 {strides = array<i32>} : memref<6x10x4xf32, #tpu.memory_space<vmem>>, vector<1x10x4xf32>,
    } else {
    }
    %c1_i32 = arith.constant 1 : i32
    %129 = arith.cmpi eq, %arg1, %c1_i32 : i32
    %130 = arith.extui %129 : i1 to i32
    %c0_i32_71 = arith.constant 0 : i32
    %131 = arith.cmpi ne, %130, %c0_i32_71 : i32
    scf.if %131 {
      %cst_85 = arith.constant 0.000000e+00 : f32
      %164 = vector.broadcast %cst_85 : f32 to vector<1x10x4xf32>
      %c5 = arith.constant 5 : index
      %c0_86 = arith.constant 0 : index
      %c0_87 = arith.constant 0 : index
      %165 = vector.load %arg14[%c5, %c0_86, %c0_87] : memref<6x10x4xf32, #tpu.memory_space<vmem>>, vector<1x10x4xf32>
      tpu.vector_store %arg14[%c5, %c0_86, %c0_87], %164 {strides = array<i32>} : memref<6x10x4xf32, #tpu.memory_space<vmem>>, vector<1x10x4xf32>,
    } else {
    }
    %c0_72 = arith.constant 0 : index
    %c0_73 = arith.constant 0 : index
    %c0_74 = arith.constant 0 : index
    %132 = vector.load %arg14[%c0_72, %c0_73, %c0_74] : memref<6x10x4xf32, #tpu.memory_space<vmem>>, vector<6x10x4xf32>
    %133 = vector.extract_strided_slice %132 {offsets = [0, 0, 0], sizes = [4, 8, 4], strides = [1, 1, 1]} : vector<6x10x4xf32> to vector<4x8x4xf32>
    %134 = vector.shape_cast %133 : vector<4x8x4xf32> to vector<32x4xf32>
    %135 = vector.extract_strided_slice %132 {offsets = [0, 1, 0], sizes = [4, 8, 4], strides = [1, 1, 1]} : vector<6x10x4xf32> to vector<4x8x4xf32>
    %136 = vector.shape_cast %135 : vector<4x8x4xf32> to vector<32x4xf32>
    %137 = vector.extract_strided_slice %132 {offsets = [0, 2, 0], sizes = [4, 8, 4], strides = [1, 1, 1]} : vector<6x10x4xf32> to vector<4x8x4xf32>
    %138 = vector.shape_cast %137 : vector<4x8x4xf32> to vector<32x4xf32>
    %139 = vector.extract_strided_slice %132 {offsets = [1, 0, 0], sizes = [4, 8, 4], strides = [1, 1, 1]} : vector<6x10x4xf32> to vector<4x8x4xf32>
    %140 = vector.shape_cast %139 : vector<4x8x4xf32> to vector<32x4xf32>
    %141 = vector.extract_strided_slice %132 {offsets = [1, 1, 0], sizes = [4, 8, 4], strides = [1, 1, 1]} : vector<6x10x4xf32> to vector<4x8x4xf32>
    %142 = vector.shape_cast %141 : vector<4x8x4xf32> to vector<32x4xf32>
    %143 = vector.extract_strided_slice %132 {offsets = [1, 2, 0], sizes = [4, 8, 4], strides = [1, 1, 1]} : vector<6x10x4xf32> to vector<4x8x4xf32>
    %144 = vector.shape_cast %143 : vector<4x8x4xf32> to vector<32x4xf32>
    %145 = vector.extract_strided_slice %132 {offsets = [2, 0, 0], sizes = [4, 8, 4], strides = [1, 1, 1]} : vector<6x10x4xf32> to vector<4x8x4xf32>
    %146 = vector.shape_cast %145 : vector<4x8x4xf32> to vector<32x4xf32>
    %147 = vector.extract_strided_slice %132 {offsets = [2, 1, 0], sizes = [4, 8, 4], strides = [1, 1, 1]} : vector<6x10x4xf32> to vector<4x8x4xf32>
    %148 = vector.shape_cast %147 : vector<4x8x4xf32> to vector<32x4xf32>
    %149 = vector.extract_strided_slice %132 {offsets = [2, 2, 0], sizes = [4, 8, 4], strides = [1, 1, 1]} : vector<6x10x4xf32> to vector<4x8x4xf32>
    %150 = vector.shape_cast %149 : vector<4x8x4xf32> to vector<32x4xf32>
    %151 = tpu.concatenate %134, %136, %138, %140, %142, %144, %146, %148, %150 in 1 : vector<32x4xf32>, vector<32x4xf32>, vector<32x4xf32>, vector<32x4xf32>, vector<32x4xf32>, vector<32x4xf32>, vector<32x4xf32>, vector<32x4xf32>, vector<32x4xf32> -> vector<32x36xf32>
    %152 = arith.truncf %151 : vector<32x36xf32> to vector<32x36xbf16>
    %c0_75 = arith.constant 0 : index
    %c0_76 = arith.constant 0 : index
    %153 = vector.load %arg11[%c0_75, %c0_76] : memref<36x8xbf16, #tpu.memory_space<vmem>>, vector<36x8xbf16>
    %cst_77 = arith.constant dense<0.000000e+00> : vector<32x8xf32>
    %154 = tpu.matmul %152, %153, %cst_77 {dimension_numbers = #tpu.dot_dimension_numbers<[1], [0], [0], [1], [0, 0, 1, 1], [], []>} : vector<32x36xbf16>, vector<36x8xbf16>, vector<32x8xf32> -> vector<32x8xf32>
    %c0_78 = arith.constant 0 : index
    %c0_79 = arith.constant 0 : index
    %155 = vector.load %arg12[%c0_78, %c0_79] : memref<1x8xf32, #tpu.memory_space<vmem>>, vector<1x8xf32>
    %156 = vector.broadcast %155 : vector<1x8xf32> to vector<32x8xf32>
    %157 = arith.addf %154, %156 : vector<32x8xf32>
    %cst_80 = arith.constant 0.000000e+00 : f32
    %158 = vector.broadcast %cst_80 : f32 to vector<32x8xf32>
    %159 = arith.maximumf %157, %158 : vector<32x8xf32>
    %160 = vector.shape_cast %159 : vector<32x8xf32> to vector<4x8x8xf32>
    %c0_81 = arith.constant 0 : index
    %c0_82 = arith.constant 0 : index
    %c0_83 = arith.constant 0 : index
    %c0_84 = arith.constant 0 : index
    %161 = vector.load %arg13[%c0_81, %c0_82, %c0_83, %c0_84] : memref<1x4x8x8xf32, #tpu.memory_space<vmem>>, vector<1x4x8x8xf32>
    %162 = vector.shape_cast %161 : vector<1x4x8x8xf32> to vector<4x8x8xf32>
    %163 = vector.shape_cast %160 : vector<4x8x8xf32> to vector<1x4x8x8xf32>
    tpu.vector_store %arg13[%c0_81, %c0_82, %c0_83, %c0_84], %163 {strides = array<i32>} : memref<1x4x8x8xf32, #tpu.memory_space<vmem>>, vector<1x4x8x8xf32>,
    return
  }
  func.func @transform_0(%arg0: i32, %arg1: i32) -> (i32, i32, i32, i32, i32) {
    %c0_i32 = arith.constant 0 : i32
    %c0_i32_0 = arith.constant 0 : i32
    %c0_i32_1 = arith.constant 0 : i32
    %c0_i32_2 = arith.constant 0 : i32
    return %arg0, %c0_i32, %arg1, %c0_i32_0, %c0_i32_1 : i32, i32, i32, i32, i32
  }
  func.func @transform_1(%arg0: i32, %arg1: i32) -> (i32, i32, i32, i32, i32) {
    %c4_i32 = arith.constant 4 : i32
    %0 = arith.muli %arg1, %c4_i32 : i32
    %c1_i32 = arith.constant 1 : i32
    %1 = arith.subi %0, %c1_i32 : i32
    %c0_i32 = arith.constant 0 : i32
    %2 = arith.maxsi %1, %c0_i32 : i32
    %c0_i32_0 = arith.constant 0 : i32
    %c0_i32_1 = arith.constant 0 : i32
    %c0_i32_2 = arith.constant 0 : i32
    %c0_i32_3 = arith.constant 0 : i32
    return %arg0, %c0_i32_0, %2, %c0_i32_1, %c0_i32_2 : i32, i32, i32, i32, i32
  }
  func.func @transform_2(%arg0: i32, %arg1: i32) -> (i32, i32, i32, i32, i32) {
    %c4_i32 = arith.constant 4 : i32
    %0 = arith.muli %arg1, %c4_i32 : i32
    %c4_i32_0 = arith.constant 4 : i32
    %1 = arith.addi %0, %c4_i32_0 : i32
    %c7_i32 = arith.constant 7 : i32
    %2 = arith.minsi %1, %c7_i32 : i32
    %c0_i32 = arith.constant 0 : i32
    %c0_i32_1 = arith.constant 0 : i32
    %c0_i32_2 = arith.constant 0 : i32
    %c0_i32_3 = arith.constant 0 : i32
    return %arg0, %c0_i32, %2, %c0_i32_1, %c0_i32_2 : i32, i32, i32, i32, i32
  }
  func.func @transform_3(%arg0: i32, %arg1: i32) -> (i32, i32) {
    %c0_i32 = arith.constant 0 : i32
    %c0_i32_0 = arith.constant 0 : i32
    %c0_i32_1 = arith.constant 0 : i32
    return %c0_i32, %c0_i32_0 : i32, i32
  }
  func.func @transform_4(%arg0: i32, %arg1: i32) -> (i32, i32) {
    %c0_i32 = arith.constant 0 : i32
    %c0_i32_0 = arith.constant 0 : i32
    %c0_i32_1 = arith.constant 0 : i32
    return %c0_i32, %c0_i32_0 : i32, i32
  }
  func.func @transform_5(%arg0: i32, %arg1: i32) -> (i32, i32, i32) {
    %c0_i32 = arith.constant 0 : i32
    %c0_i32_0 = arith.constant 0 : i32
    %c0_i32_1 = arith.constant 0 : i32
    %c0_i32_2 = arith.constant 0 : i32
    return %c0_i32, %c0_i32_0, %c0_i32_1 : i32, i32, i32
  }
  func.func @transform_6(%arg0: i32, %arg1: i32) -> (i32, i32, i32) {
    %c0_i32 = arith.constant 0 : i32
    %c0_i32_0 = arith.constant 0 : i32
    %c0_i32_1 = arith.constant 0 : i32
    %c0_i32_2 = arith.constant 0 : i32
    return %c0_i32, %c0_i32_0, %c0_i32_1 : i32, i32, i32
  }
  func.func @transform_7(%arg0: i32, %arg1: i32) -> (i32, i32, i32) {
    %c0_i32 = arith.constant 0 : i32
    %c0_i32_0 = arith.constant 0 : i32
    %c0_i32_1 = arith.constant 0 : i32
    %c0_i32_2 = arith.constant 0 : i32
    return %c0_i32, %c0_i32_0, %c0_i32_1 : i32, i32, i32
  }
  func.func @transform_8(%arg0: i32, %arg1: i32) -> (i32, i32) {
    %c0_i32 = arith.constant 0 : i32
    %c0_i32_0 = arith.constant 0 : i32
    %c0_i32_1 = arith.constant 0 : i32
    return %c0_i32, %c0_i32_0 : i32, i32
  }
  func.func @transform_9(%arg0: i32, %arg1: i32) -> (i32, i32) {
    %c0_i32 = arith.constant 0 : i32
    %c0_i32_0 = arith.constant 0 : i32
    %c0_i32_1 = arith.constant 0 : i32
    return %c0_i32, %c0_i32_0 : i32, i32
  }
  func.func @transform_10(%arg0: i32, %arg1: i32) -> (i32, i32) {
    %c0_i32 = arith.constant 0 : i32
    %c0_i32_0 = arith.constant 0 : i32
    %c0_i32_1 = arith.constant 0 : i32
    return %c0_i32, %c0_i32_0 : i32, i32
  }
  func.func @transform_11(%arg0: i32, %arg1: i32) -> (i32, i32, i32, i32) {
    %c0_i32 = arith.constant 0 : i32
    %c0_i32_0 = arith.constant 0 : i32
    %c0_i32_1 = arith.constant 0 : i32
    return %arg0, %arg1, %c0_i32, %c0_i32_0 : i32, i32, i32, i32
  }
}

</mosaic_0001>

<bundles_post_ra>
// kernel: tpu_custom_call.1
= control target key start
LH: loop header
LB: loop body
LE: loop exit
PB: predicated region body
PF: predicated region fallthrough
CT: control target
= control target key end

     0   :  { %s4280_s0 = inlined_call_operand.vmem [shape: bf16[2,4,8,8,4], index: 0, kind: input, shape index: {}]   ;;  %s4281_s1 = inlined_call_operand.vmem [shape: bf16[2,4,8,8,4], index: 1, kind: input, shape index: {}]   ;;  %s4282_s2 = inlined_call_operand.vmem [shape: bf16[2,4,8,8,4], index: 2, kind: input, shape index: {}]   ;;  %s4283_s3 = inlined_call_operand.vmem [shape: bf16[4,4], index: 3, kind: input, shape index: {}]   ;;  %s4284_s4 = inlined_call_operand.vmem [shape: f32[1,4], index: 4, kind: input, shape index: {}]   ;;  %s4285_s5 = inlined_call_operand.vmem [shape: bf16[4,4,8], index: 5, kind: input, shape index: {}]   ;;  %s4286_s6 = inlined_call_operand.vmem [shape: f32[4,1,8], index: 6, kind: input, shape index: {}]   ;;  %s4287_s7 = inlined_call_operand.vmem [shape: bf16[4,8,4], index: 7, kind: input, shape index: {}]   ;;  %s4288_s8 = inlined_call_operand.vmem [shape: f32[1,4], index: 8, kind: input, shape index: {}]   ;;  %s4289_s9 = inlined_call_operand.vmem [shape: bf16[36,8], index: 9, kind: input, shape index: {}]   ;;  %s4290_s10 = inlined_call_operand.vmem [shape: f32[1,8], index: 10, kind: input, shape index: {}]   ;;  %s4291_s11 = inlined_call_operand.hbm [shape: f32[2,8,8,8], index: 11, kind: output, shape index: {}]  }
   0x1   :  { %4299 = sst [smem:[#allocation18_spill]] %s4284_s4 }
   0x2   :  { %4300 = sst [smem:[#allocation19_spill]] %s4286_s6 }
   0x3   :  { %4301 = sst [smem:[#allocation20_spill]] %s4288_s8 }
   0x4   :  { %4302 = sst [smem:[#allocation21_spill]] %s4289_s9 }
   0x5   :  { %4303 = sst [smem:[#allocation22_spill]] %s4290_s10 }
   0x6   :  { %4304 = sst [smem:[#allocation23_spill]] %s4291_s11 }
   0x7   :  { %16 = vsyncpa [#allocation7], 0 }
   0x8   :  { %18 = vsyncpa [#allocation7 + $0x1], 0  ;;  %s3415_s17 = smov 0   ;;  %s3417_s18 = smov 0  }
   0x9   :  { %s3419_s19 = smov 0   ;;  %s3421_s20 = smov 0  }
   0xa   :  { %s3423_s21 = smov 0   ;;  %s3425_s22 = smov 0  }
   0xb   :  { %s3427_s23 = smov 0   ;;  %s3429_s24 = smov 0  }
   0xc   :  { %s3431_s25 = smov 0   ;;  %s3433_s26 = smov 0  }
   0xd   :  { %s3435_s27 = smov 0   ;;  %s3437_s28 = smov 0  }
   0xe LB: > { %4305 = sst [smem:[#allocation9_spill]] %s3313_s24  ;;  %s33_s12 = sadd.s32 1, %s3321_s26  ;;  %s3329_s28 = sphi %s3437_s28, %s24_s28   ;;  %s3325_s27 = sphi %s3435_s27, %s4346_s27   ;;  %s3321_s26 = sphi %s3433_s26, %s4336_s26   ;;  %s3317_s25 = sphi %s3431_s25, %s4345_s25   ;;  %s3313_s24 = sphi %s3429_s24, %s4335_s24   ;;  %s3309_s23 = sphi %s3427_s23, %s4344_s23   ;;  %s3305_s22 = sphi %s3425_s22, %s4343_s22   ;;  %s3301_s21 = sphi %s3423_s21, %s4342_s21   ;;  %s3297_s20 = sphi %s3421_s20, %s4341_s20   ;;  %s3293_s19 = sphi %s3419_s19, %s4340_s19   ;;  %s3289_s18 = sphi %s3417_s18, %s4339_s18   ;;  %s3285_s17 = sphi %s3415_s17, %s4338_s17  }
   0xf   : > { %4306 = sst [smem:[#allocation10_spill]] %s3317_s25  ;;  %s36_s13 = sadd.s32 1, %s3325_s27 }
  0x10   : > { %4307 = sst [smem:[#allocation11_spill]] %s3321_s26  ;;  %p34_p0 = scmp.ge.s32.totalorder %s33_s12, 2 }
  0x11   : > { %s45_s14 = sadd.s32 1, %s3309_s23  ;;  %p52_p1 = scmp.ne.s32.totalorder %s3309_s23, %s3305_s22 }
  0x12   : > { %p53_p2 = scmp.eq.s32.totalorder %s3329_s28, 0  ;;  %s4348_s12 = smov (%p34_p0, %s33_s12), 0 }
  0x13   : > { %4308 = sst [smem:[#allocation12_spill]] %s4348_s12  ;;  %s4350_s13 = smov (!%p34_p0, %s36_s13), %s3325_s27 }
  0x14   : > { %s41_s15 = ssub.s32 %s3321_s26, %s4348_s12  ;;  %p3493_p3 = por %p53_p2, %p52_p1 }
  0x15   : > { %p38_p4 = scmp.ge.s32.totalorder %s4350_s13, 2  ;;  %s3498_s30 = sshll.u32 %s3321_s26, 2 }
  0x16   : > { %s2577_s29 = sadd.s32 4294967295, %s3498_s30  ;;  %s2578_s11 = sshll.u32 %s4348_s12, 2 }
  0x17   : > { %s4352_s13 = smov (%p38_p4, %s4350_s13), 0  ;;  %p70_p5 = scmp.gt.s32.totalorder %s2577_s29, 0 }
  0x18   : > { %4310 = sst [smem:[#allocation13_spill]] %s4352_s13  ;;  %s2579_s10 = sadd.s32 4294967295, %s2578_s11 }
  0x19   : > { %s40_s25 = ssub.s32 %s3325_s27, %s4352_s13  ;;  %p74_p6 = scmp.gt.s32.totalorder %s2579_s10, 0 }
  0x1a   : > { %s42_s9 = sor.u32 %s41_s15, %s40_s25  ;;  %s81_s24 = sadd.s32 1, %s3301_s21 }
  0x1b   : > { %p43_p7 = scmp.eq.s32.totalorder %s42_s9, 0  ;;  %p88_p8 = scmp.ne.s32.totalorder %s3301_s21, %s3297_s20 }
  0x1c   : > { %s4354_s29 = smov (!%p70_p5, %s2577_s29), 0  ;;  %s4356_s10 = smov (!%p74_p6, %s2579_s10), 0 }
  0x1d   : > { %s3512_s26 = scalar_select %p43_p7, %s3309_s23, %s45_s14  }
  0x1e   : > { %p3516_p9 = por %p88_p8, %p53_p2  ;;  %s105_s15 = sadd.s32 4, %s3498_s30 }
  0x1f   : > { %4311 = sst [smem:[#allocation14_spill]] %s3512_s26  ;;  %s77_s13 = ssub.s32 %s4354_s29, %s4356_s10 }
  0x20   : > { %p106_p10 = scmp.lt.s32.totalorder %s105_s15, 7  ;;  %s78_s9 = sor.u32 %s77_s13, %s40_s25 }
  0x21   : > { %s109_s8 = sadd.s32 4, %s2578_s11  ;;  %p79_p11 = scmp.eq.s32.totalorder %s78_s9, 0 }
  0x22   : > { %p110_p12 = scmp.lt.s32.totalorder %s109_s8, 7  ;;  %s4358_s15 = smov (!%p106_p10, %s105_s15), 7 }
  0x23   : > { %s3525_s14 = scalar_select %p79_p11, %s3301_s21, %s81_s24  }
  0x24   : > { %s4360_s8 = smov (!%p110_p12, %s109_s8), 7  ;;  %s117_s26 = sadd.s32 1, %s3293_s19 }
  0x25   : > { %4313 = sst [smem:[#allocation15_spill]] %s3525_s14  ;;  %p124_p13 = scmp.ne.s32.totalorder %s3293_s19, %s3289_s18 }
  0x26   : > { %s113_s10 = ssub.s32 %s4358_s15, %s4360_s8  ;;  %s4314_s6 = sadd.s32 4294967295, %s3329_s28  }
  0x27   : > { %p324_p0 = scmp.eq.s32.totalorder %s4314_s6, 3  ;;  %s114_s4 = sor.u32 %s113_s10, %s40_s25 }
  0x28   : > { %p3535_p4 = por %p124_p13, %p53_p2  ;;  %p115_p5 = scmp.eq.s32.totalorder %s114_s4, 0 }
  0x29   : > { %p3542_p6 = por %p324_p0, %p52_p1  ;;  %p329_p7 = scmp.ne.s32.totalorder %s3305_s22, %s3285_s17 }
  0x2a   : > { %s4317_s24 = sadd.s32 4294967294, %s3329_s28   ;;  %p2583_p2 = scmp.ge.s32.totalorder %s3329_s28, 4 }
  0x2b   : > { %p330_p8 = scmp.eq.s32.totalorder %s4317_s24, 3 }
  0x2c   : > { %s3551_s9 = scalar_select %p115_p5, %s3293_s19, %s117_s26  }
  0x2d   : > { %p3553_p10 = por %p330_p8, %p329_p7  ;;  %370 = sbr.rel (%p2583_p2) target bundleno = 82 (0x52), region = 48 }
  0x2e   : > { %4318 = sst [smem:[#allocation16_spill]] %s3551_s9 }
  0x2f   : > { %s4319_s8 = scalar_select %p3553_p10, 1, 0 }
  0x31   : > { %4320 = sst [smem:[#allocation17_spill]] %s4319_s8 }
  0x34   : > { %373 = sbr.rel (!%p3493_p3) target bundleno = 62 (0x3e), region = 52  ;;  %s375_s4 = sand.u32 (%p3493_p3), 1, %s3309_s23  }
  0x35   : > { %s2586_s6 = sshll.u32 (%p3493_p3), %s3325_s27, 5  ;;  %s2584_s25 = sshll.u32 (%p3493_p3), %s375_s4, 6 }
  0x36   : > { %s380_s10 = sadd.s32 (%p3493_p3), %s2586_s6, %s3498_s30  ;;  %s377_s8 = scalar_lea.vmem (%p3493_p3), [#allocation3], %s2584_s25 }
  0x37   : > { %s2587_s24 = sshll.u32 (%p3493_p3), %s380_s10, 2 }
  0x38   : > { %s382_s9 = scalar_lea.vmem (%p3493_p3), %s4280_s0, %s2587_s24 }
  0x39   : > { %v398_v0 = vld [vmem:[%s382_s9] sm:$0xff] (%p3493_p3)   ;;  %v402_v1 = vld [vmem:[%s382_s9 + $0x8] sm:$0xff] (%p3493_p3)  }
  0x3a   : > { %v406_v2 = vld [vmem:[%s382_s9 + $0x20] sm:$0xff] (%p3493_p3)   ;;  %399 = vst [vmem:[%s377_s8] sm:$0xff] (%p3493_p3), %v398_v0   ;;  %403 = vst [vmem:[%s377_s8 + $0x8] sm:$0xff] (%p3493_p3), %v402_v1   ;;  %v410_v3 = vld [vmem:[%s382_s9 + $0x28] sm:$0xff] (%p3493_p3)  }
  0x3b   : > { %407 = vst [vmem:[%s377_s8 + $0x10] sm:$0xff] %v406_v2   ;;  %v414_v4 = vld [vmem:[%s382_s9 + $0x40] sm:$0xff]   ;;  %v418_v5 = vld [vmem:[%s382_s9 + $0x48] sm:$0xff]   ;;  %411 = vst [vmem:[%s377_s8 + $0x18] sm:$0xff] %v410_v3  }
  0x3c   : > { %415 = vst [vmem:[%s377_s8 + $0x20] sm:$0xff] %v414_v4   ;;  %419 = vst [vmem:[%s377_s8 + $0x28] sm:$0xff] %v418_v5   ;;  %v422_v6 = vld [vmem:[%s382_s9 + $0x60] sm:$0xff]   ;;  %v426_v7 = vld [vmem:[%s382_s9 + $0x68] sm:$0xff]  }
  0x3d   : > { %423 = vst [vmem:[%s377_s8 + $0x30] sm:$0xff] %v422_v6   ;;  %427 = vst [vmem:[%s377_s8 + $0x38] sm:$0xff] %v426_v7  }
  0x3e PF: > { %484 = sbr.rel (!%p3516_p9) target bundleno = 72 (0x48), region = 93  ;;  %s486_s30 = sand.u32 (%p3516_p9), 1, %s3301_s21  }
  0x3f   : > { %s2591_s16 = sshll.u32 (%p3516_p9), %s3325_s27, 5  ;;  %s2588_s14 = sshll.u32 (%p3516_p9), %s486_s30, 4 }
  0x40   : > { %s494_s4 = sadd.s32 (%p3516_p9), %s2591_s16, %s4354_s29  ;;  %s488_s9 = scalar_lea.vmem (%p3516_p9), [#allocation4], %s2588_s14 }
  0x41   : > { %s2592_s6 = sshll.u32 (%p3516_p9), %s494_s4, 2 }
  0x42   : > { %s496_s24 = scalar_lea.vmem (%p3516_p9), %s4281_s1, %s2592_s6 }
  0x43   : > { %v512_v8 = vld [vmem:[%s496_s24] sm:$0xf] (%p3516_p9) }
  0x44   : > { %v514_v9 = vld [vmem:[%s496_s24 + $0x20] sm:$0xf] (%p3516_p9)  ;;  %513 = vst [vmem:[%s488_s9] sm:$0xf] (%p3516_p9), %v512_v8 }
  0x45   : > { %v516_v10 = vld [vmem:[%s496_s24 + $0x40] sm:$0xf]  ;;  %515 = vst [vmem:[%s488_s9 + $0x4] sm:$0xf] %v514_v9 }
  0x46   : > { %517 = vst [vmem:[%s488_s9 + $0x8] sm:$0xf] %v516_v10  ;;  %v518_v11 = vld [vmem:[%s496_s24 + $0x60] sm:$0xf] }
  0x47   : > { %519 = vst [vmem:[%s488_s9 + $0xc] sm:$0xf] %v518_v11 }
  0x48 PF: > { %550 = sbr.rel (!%p3535_p4) target bundleno = 82 (0x52), region = 134  ;;  %s552_s29 = sand.u32 (%p3535_p4), 1, %s3293_s19  }
  0x49   : > { %s2595_s12 = sshll.u32 (%p3535_p4), %s3325_s27, 5  ;;  %s2593_s8 = sshll.u32 (%p3535_p4), %s552_s29, 4 }
  0x4a   : > { %s560_s26 = sadd.s32 (%p3535_p4), %s2595_s12, %s4358_s15  ;;  %s554_s6 = scalar_lea.vmem (%p3535_p4), [#allocation5], %s2593_s8 }
  0x4b   : > { %s2596_s30 = sshll.u32 (%p3535_p4), %s560_s26, 2 }
  0x4c   : > { %s562_s14 = scalar_lea.vmem (%p3535_p4), %s4282_s2, %s2596_s30 }
  0x4d   : > { %v578_v12 = vld [vmem:[%s562_s14] sm:$0xf] (%p3535_p4) }
  0x4e   : > { %v580_v13 = vld [vmem:[%s562_s14 + $0x20] sm:$0xf] (%p3535_p4)  ;;  %579 = vst [vmem:[%s554_s6] sm:$0xf] (%p3535_p4), %v578_v12 }
  0x4f   : > { %v582_v14 = vld [vmem:[%s562_s14 + $0x40] sm:$0xf]  ;;  %581 = vst [vmem:[%s554_s6 + $0x4] sm:$0xf] %v580_v13 }
  0x50   : > { %583 = vst [vmem:[%s554_s6 + $0x8] sm:$0xf] %v582_v14  ;;  %v584_v15 = vld [vmem:[%s562_s14 + $0x60] sm:$0xf] }
  0x51   : > { %585 = vst [vmem:[%s554_s6 + $0xc] sm:$0xf] %v584_v15 }
  0x52 PF: > { %p2597_p1 = scmp.ge.s32.totalorder %s3329_s28, 1  ;;  %p615_p3 = scmp.lt.s32.totalorder %s3329_s28, 5 }
  0x54   : > { %p616_p9 = pnand %p2597_p1, %p615_p3 }
  0x55   : > { %v718_v16 = vld [vmem:[%s4283_s3] sm:$0x3] (!%p616_p9)  ;;  %vm751_vm0 = vcmask (!%p616_p9), 1041408   ;;  %s3588_s25 = sand.u32 (!%p616_p9), 1, %s3305_s22   ;;  %v3331_v17 = vmov (!%p616_p9), 0.0   ;;  %vm3332_vm1 = vmmov (!%p616_p9), 0  }
  0x56   : > { %619 = sbr.rel (%p616_p9) target bundleno = 2033 (0x7f1), region = 175  ;;  %2711 = vmatprep.subr.bf16.mxu0 (!%p616_p9), %v3331_v17  ;;  %v753_v18 = vsel (!%p616_p9), %vm751_vm0, %v718_v16, 0  ;;  %2713 = vmatprep.mubr.msk.bf16.mxu0 (!%p616_p9), %vm3332_vm1, %v3331_v17  ;;  %s2598_s10 = sshll.u32 (!%p616_p9), %s3588_s25, 6  ;;  %vm741_vm2 = vcmask (!%p616_p9), 31744   ;;  %v822_v26 = vld [vmem:[%s4285_s5] sm:$0x3] (!%p616_p9) }
  0x57   : > { %s629_s24 = sand.u32 (!%p616_p9), 1, %s3297_s20   ;;  %2712 = vmatpush3.bf16.msra.mxu0 (!%p616_p9), %v753_v18  ;;  %2847 = vmatprep.subr.bf16.mxu1 (!%p616_p9), %v3331_v17  ;;  %s2601_s29 = sshll.u32 (!%p616_p9), %s3588_s25, 5  ;;  %v840_v27 = vsel (!%p616_p9), %vm751_vm0, %v822_v26, 0  ;;  %v908_v28 = vld [vmem:[%s4287_s7] sm:$0xf] (!%p616_p9)  ;;  %vm919_vm3 = vcmask (!%p616_p9), 1043456  }
  0x58   : > { %s2599_s9 = sshll.u32 (!%p616_p9), %s629_s24, 4  ;;  %s3598_s12 = scalar_lea.vmem (!%p616_p9), [#allocation3], %s2598_s10  ;;  %2848 = vmatpush3.bf16.msra.mxu1 (!%p616_p9), %v753_v18  ;;  %2721 = vmatprep.mubr.msk.bf16.mxu1 (!%p616_p9), %vm3332_vm1, %v3331_v17  ;;  %v921_v29 = vsel (!%p616_p9), %vm919_vm3, %v908_v28, 0  ;;  %v2617_v37 = vld [vmem:[%s4285_s5 + $0x2] sm:$0x3] (!%p616_p9)  ;;  %vm909_vm4 = vcmask (!%p616_p9), 64512  }
  0x59   : > { %v698_v19 = vld [vmem:[%s3598_s12] sm:$0xf] (!%p616_p9)  ;;  %s3603_s8 = scalar_lea.vmem (!%p616_p9), [#allocation4], %s2599_s9  ;;  %2725 = vmatprep.subr.bf16.mxu1 (!%p616_p9), %v3331_v17  ;;  %2739 = vmatprep.subr.bf16.mxu0 (!%p616_p9), %v3331_v17  ;;  %s636_s20 = sand.u32 (!%p616_p9), 1, %s3289_s18   ;;  %v701_v22 = vld [vmem:[%s3598_s12 + $0xc] sm:$0xf] (!%p616_p9) }
  0x5a   : > { %v694_v20 = vld [vmem:[%s3603_s8] sm:$0xf] (!%p616_p9)  ;;  %s2600_s26 = sshll.u32 (!%p616_p9), %s636_s20, 4  ;;  %v3038_v25 = vld [vmem:[%s3598_s12 + $0x4] sm:$0xff] (!%p616_p9)   ;;  %s4321_s13 = sld [smem:[#allocation18_spill]] (!%p616_p9)  ;;  %v1027_v43 = vsel (!%p616_p9), %vm751_vm0, %v2617_v37, 0 }
  0x5b   : > { %v2603_v21 = vcombine.low (!%p616_p9), %v694_v20, %v698_v19  ;;  %s3613_s30 = scalar_lea.vmem (!%p616_p9), [#allocation5], %s2600_s26  ;;  %v695_v60 = vld [vmem:[%s3603_s8 + $0x4] sm:$0xf] (!%p616_p9)  ;;  %v702_v61 = vld [vmem:[%s3598_s12 + $0x10] sm:$0xf] (!%p616_p9)  ;;  %s4322_s14 = sld [smem:[#allocation19_spill]] (!%p616_p9) }
  0x5c   : > { %v714_v23 = vld [vmem:[%s3613_s30] sm:$0xf] (!%p616_p9)  ;;  %v2630_v62 = vld [vmem:[%s4285_s5 + $0x4] sm:$0x3] (!%p616_p9)  ;;  %v2620_v63 = vcombine.low (!%p616_p9), %v695_v60, %v702_v61  ;;  %v703_v1 = vld [vmem:[%s3598_s12 + $0x14] sm:$0xff] (!%p616_p9)   ;;  %s4323_s10 = sld [smem:[#allocation20_spill]] (!%p616_p9) }
  0x5d   : > { %2714 = vmatmul.mubr.msk.bf16.vlgmr.msra.gmra.mrb[0].mxu0 %vm741_vm2, %v2603_v21  ;;  %v2605_v24 = vcombine.low %v701_v22, %v714_v23  ;;  %v1207_v0 = vsel %vm751_vm0, %v2630_v62, 0  ;;  %v705_v2 = vld [vmem:[%s3598_s12 + $0x1c] sm:$0xf]  ;;  %v715_v3 = vld [vmem:[%s3613_s30 + $0x4] sm:$0xf]  ;;  %s3333_s24 = smov 127  }
  0x5e   : > { %2717 = vmatprep.mubr.msk.bf16.mxu0 %vm3332_vm1, %v3331_v17  ;;  %2740 = vmatpush3.bf16.msra.mxu0 %v921_v29  ;;  %v2622_v4 = vcombine.low %v705_v2, %v715_v3  ;;  %v696_v5 = vld [vmem:[%s3603_s8 + $0x8] sm:$0xf]  ;;  %v706_v6 = vld [vmem:[%s3598_s12 + $0x20] sm:$0xf]  ;;  %v2643_v7 = vld [vmem:[%s4285_s5 + $0x6] sm:$0x3] }
  0x5f   : > { %2722 = vmatmul.mubr.msk.bf16.vlgmr.msra.gmra.mrb[0].mxu1 %vm741_vm2, %v2605_v24  ;;  %2767 = vmatprep.subr.bf16.mxu0 %v3331_v17  ;;  %v2633_v8 = vcombine.low %v696_v5, %v706_v6  ;;  %v1387_v9 = vsel %vm751_vm0, %v2643_v7, 0  ;;  %v707_v10 = vld [vmem:[%s3598_s12 + $0x24] sm:$0xff]   ;;  %v709_v11 = vld [vmem:[%s3598_s12 + $0x2c] sm:$0xf]  ;;  %v710_v15 = vld [vmem:[%s3598_s12 + $0x30] sm:$0xf] }
  0x60   : > { %2727 = vmatprep.mubr.msk.bf16.mxu1 %vm3332_vm1, %v3331_v17  ;;  %2726 = vmatpush3.bf16.msra.mxu1 %v840_v27  ;;  %v2602_v30 = vld [vmem:[%s4321_s13] ss:$0 sm:$0xff]  ;;  %v716_v12 = vld [vmem:[%s3613_s30 + $0x8] sm:$0xf]  ;;  %v697_v14 = vld [vmem:[%s3603_s8 + $0xc] sm:$0xf] }
  0x61   : > { %2753 = vmatprep.subr.bf16.mxu1 %v3331_v17  ;;  %v2635_v13 = vcombine.low %v709_v11, %v716_v12  ;;  %v2646_v16 = vcombine.low %v697_v14, %v710_v15  ;;  %v711_v18 = vld [vmem:[%s3598_s12 + $0x34] sm:$0xff]   ;;  %v713_v19 = vld [vmem:[%s3598_s12 + $0x3c] sm:$0xf]  ;;  %v2609_v22 = vld [vmem:[%s4322_s14] ss:$0 sm:$0xff]  ;;  %s3334_s9 = smov 126  }
  0x62   : > { %v717_v20 = vld [vmem:[%s3613_s30 + $0xc] sm:$0xf]  ;;  %v2626_v29 = vld [vmem:[%s4287_s7 + $0x4] sm:$0xf]  ;;  %v2639_v7 = vld [vmem:[%s4287_s7 + $0x8] sm:$0xf] }
  0x63   : > { %v2648_v21 = vcombine.low %v713_v19, %v717_v20  ;;  %v1287_v11 = vsel %vm919_vm3, %v2639_v7, 0  ;;  %s3335_s20 = smov 1   ;;  %s3336_s26 = smov 2   ;;  %vm2102_vm5 = vcmask 1040384   ;;  %vm2116_vm6 = vcmask 25600  }
  0x64   : > { %s3337_s18 = smov 3   ;;  %s3338_s16 = smov 125  }
  0x65   : > { %2718 = vmatmul.mubr.msk.bf16.gmra.mrb[4].mxu0 %vm741_vm2, %v3038_v25 }
  0x66   : > { %2741 = vmatprep.mubr.msk.bf16.mxu0 %vm3332_vm1, %v3331_v17 }
 0x130   : > { %v789_v31 = vpop.f32.mrb[0].mxu0 }
 0x131   : > { %v3636_v32 = vadd.f32 %v2602_v30, %v789_v31  ;;  %v2715_v33 = vpop.f32.mrb[1].mxu0 }
 0x132   : > { %v792_v34 = vpop.f32.mrb[2].mxu0  ;;  %v805_v40 = vpop.f32.mrb[0].mxu1 }
 0x133   : > { %v3638_v35 = vadd.f32 %v2602_v30, %v792_v34  ;;  %v2716_v36 = vpop.f32.mrb[3].mxu0  ;;  %v812_v38 = vmax.f32 %v3636_v32, 0.0  ;;  %v2723_v41 = vpop.f32.mrb[1].mxu1  ;;  %v3664_v55 = vadd.f32 %v2602_v30, %v805_v40  ;;  %v1107_v34 = vsel %vm919_vm3, %v2626_v29, 0 }
 0x134   : > { %v808_v44 = vpop.f32.mrb[2].mxu1 }
 0x135   : > { %v813_v39 = vmax.f32 %v3638_v35, 0.0  ;;  %v2724_v46 = vpop.f32.mrb[3].mxu1  ;;  %v3666_v56 = vadd.f32 %v2602_v30, %v808_v44  ;;  %v816_v57 = vmax.f32 %v3664_v55, 0.0 }
 0x137   : > { %v819_v42 = vpack.c.bf16 %v813_v39, %v812_v38  ;;  %v817_v58 = vmax.f32 %v3666_v56, 0.0 }
 0x138   : > { %v797_v45 = vpop.f32.mrb[4].mxu0 }
 0x139   : > { %v3650_v47 = vadd.f32 %v2602_v30, %v797_v45  ;;  %v2719_v48 = vpop.f32.mrb[5].mxu0  ;;  %2728 = vmatmul.mubr.msk.bf16.vlgmr.msra.gmra.mrb[4].mxu1 %vm741_vm2, %v819_v42  ;;  %v821_v59 = vpack.c.bf16 %v817_v58, %v816_v57 }
 0x13a   : > { %2754 = vmatpush3.bf16.msra.mxu1 %v1027_v43  ;;  %v800_v49 = vpop.f32.mrb[6].mxu0  ;;  %2731 = vmatprep.mubr.msk.bf16.mxu1 %vm3332_vm1, %v3331_v17 }
 0x13b   : > { %v3655_v50 = vadd.f32 %v2602_v30, %v800_v49  ;;  %v2720_v51 = vpop.f32.mrb[7].mxu0  ;;  %2781 = vmatprep.subr.bf16.mxu1 %v3331_v17  ;;  %v814_v52 = vmax.f32 %v3650_v47, 0.0 }
 0x13d   : > { %v815_v53 = vmax.f32 %v3655_v50, 0.0 }
 0x13f   : > { %v820_v54 = vpack.c.bf16 %v815_v53, %v814_v52 }
 0x141   : > { %2732 = vmatmul.mubr.msk.bf16.gmra.mrb[8].mxu1 %vm741_vm2, %v820_v54 }
 0x142   : > { %2735 = vmatprep.mubr.msk.bf16.mxu1 %vm3332_vm1, %v3331_v17 }
 0x149   : > { %2736 = vmatmul.mubr.msk.bf16.gmra.mrb[12].mxu1 %vm741_vm2, %v821_v59 }
 0x14a   : > { %2755 = vmatprep.mubr.msk.bf16.mxu1 %vm3332_vm1, %v3331_v17 }
 0x151   : > { %2756 = vmatmul.mubr.msk.bf16.vlgmr.msra.gmra.mrb[16].mxu1 %vm741_vm2, %v2620_v63  ;;  %v2619_v63 = vld [vmem:[%s4322_s14 + $0x1] ss:$0 sm:$0xff] }
 0x152   : > { %2782 = vmatpush3.bf16.msra.mxu1 %v1207_v0  ;;  %2759 = vmatprep.mubr.msk.bf16.mxu1 %vm3332_vm1, %v3331_v17 }
 0x153   : > { %2809 = vmatprep.subr.bf16.mxu1 %v3331_v17 }
 0x159   : > { %2760 = vmatmul.mubr.msk.bf16.gmra.mrb[20].mxu1 %vm741_vm2, %v703_v1 }
 0x15a   : > { %2763 = vmatprep.mubr.msk.bf16.mxu1 %vm3332_vm1, %v3331_v17 }
 0x161   : > { %2764 = vmatmul.mubr.msk.bf16.gmra.mrb[24].mxu1 %vm741_vm2, %v2622_v4 }
 0x162   : > { %2783 = vmatprep.mubr.msk.bf16.mxu1 %vm3332_vm1, %v3331_v17 }
 0x169   : > { %2784 = vmatmul.mubr.msk.bf16.vlgmr.msra.gmra.mrb[28].mxu1 %vm741_vm2, %v2633_v8 }
 0x16a   : > { %2810 = vmatpush3.bf16.msra.mxu1 %v1387_v9  ;;  %2787 = vmatprep.mubr.msk.bf16.mxu1 %vm3332_vm1, %v3331_v17 }
 0x171   : > { %2788 = vmatmul.mubr.msk.bf16.gmra.mrb[32].mxu1 %vm741_vm2, %v707_v10 }
 0x172   : > { %2791 = vmatprep.mubr.msk.bf16.mxu1 %vm3332_vm1, %v3331_v17 }
 0x179   : > { %2792 = vmatmul.mubr.msk.bf16.gmra.mrb[36].mxu1 %vm741_vm2, %v2635_v13 }
 0x17a   : > { %2811 = vmatprep.mubr.msk.bf16.mxu1 %vm3332_vm1, %v3331_v17 }
 0x181   : > { %2812 = vmatmul.mubr.msk.bf16.vlgmr.msra.gmra.mrb[40].mxu1 %vm741_vm2, %v2646_v16 }
 0x182   : > { %2815 = vmatprep.mubr.msk.bf16.mxu1 %vm3332_vm1, %v3331_v17 }
 0x189   : > { %2816 = vmatmul.mubr.msk.bf16.gmra.mrb[44].mxu1 %vm741_vm2, %v711_v18 }
 0x18a   : > { %2819 = vmatprep.mubr.msk.bf16.mxu1 %vm3332_vm1, %v3331_v17 }
 0x191   : > { %2820 = vmatmul.mubr.msk.bf16.gmra.mrb[48].mxu1 %vm741_vm2, %v2648_v21 }
 0x20c   : > { %v876_v23 = vpop.f32.mrb[4].mxu1 }
 0x20d   : > { %v877_v24 = vadd.f32 %v2609_v22, %v876_v23  ;;  %v2729_v25 = vpop.f32.mrb[5].mxu1 }
 0x20e   : > { %v879_v26 = vpop.f32.mrb[6].mxu1 }
 0x20f   : > { %v880_v27 = vadd.f32 %v2609_v22, %v879_v26  ;;  %v2730_v28 = vpop.f32.mrb[7].mxu1  ;;  %v899_v30 = vmax.f32 %v877_v24, 0.0 }
 0x211   : > { %v900_v31 = vmax.f32 %v880_v27, 0.0 }
 0x213   : > { %v905_v33 = vpack.c.bf16 %v900_v31, %v899_v30  ;;  %v2632_v30 = vld [vmem:[%s4322_s14 + $0x2] ss:$0 sm:$0xff] }
 0x214   : > { %v884_v36 = vpop.f32.mrb[8].mxu1 }
 0x215   : > { %v885_v37 = vadd.f32 %v2609_v22, %v884_v36  ;;  %v2733_v40 = vpop.f32.mrb[9].mxu1  ;;  %2742 = vmatmul.mubr.msk.bf16.vlgmr.msra.gmra.mrb[8].mxu0 %vm909_vm4, %v905_v33 }
 0x216   : > { %2768 = vmatpush3.bf16.msra.mxu0 %v1107_v34  ;;  %v887_v41 = vpop.f32.mrb[10].mxu1  ;;  %2745 = vmatprep.mubr.msk.bf16.mxu0 %vm3332_vm1, %v3331_v17 }
 0x217   : > { %v888_v42 = vadd.f32 %v2609_v22, %v887_v41  ;;  %v2734_v43 = vpop.f32.mrb[11].mxu1  ;;  %2795 = vmatprep.subr.bf16.mxu0 %v3331_v17  ;;  %v901_v44 = vmax.f32 %v885_v37, 0.0 }
 0x219   : > { %v902_v45 = vmax.f32 %v888_v42, 0.0  ;;  %v2652_v42 = vld [vmem:[%s4287_s7 + $0xc] sm:$0xf] }
 0x21b   : > { %v906_v46 = vpack.c.bf16 %v902_v45, %v901_v44 }
 0x21c   : > { %v892_v48 = vpop.f32.mrb[12].mxu1 }
 0x21d   : > { %v893_v49 = vadd.f32 %v2609_v22, %v892_v48  ;;  %v2737_v51 = vpop.f32.mrb[13].mxu1  ;;  %2746 = vmatmul.mubr.msk.bf16.gmra.mrb[12].mxu0 %vm909_vm4, %v906_v46  ;;  %v1467_v46 = vsel %vm919_vm3, %v2652_v42, 0  ;;  %v2616_v42 = vld [vmem:[%s4323_s10] ss:$0 sm:$0xff] }
 0x21e   : > { %v895_v54 = vpop.f32.mrb[14].mxu1  ;;  %2749 = vmatprep.mubr.msk.bf16.mxu0 %vm3332_vm1, %v3331_v17 }
 0x21f   : > { %v896_v59 = vadd.f32 %v2609_v22, %v895_v54  ;;  %v2738_v60 = vpop.f32.mrb[15].mxu1  ;;  %v903_v61 = vmax.f32 %v893_v49, 0.0 }
 0x221   : > { %v904_v62 = vmax.f32 %v896_v59, 0.0 }
 0x223   : > { %v907_v0 = vpack.c.bf16 %v904_v62, %v903_v61 }
 0x224   : > { %v1063_v1 = vpop.f32.mrb[16].mxu1 }
 0x225   : > { %v1064_v2 = vadd.f32 %v2619_v63, %v1063_v1  ;;  %2750 = vmatmul.mubr.msk.bf16.gmra.mrb[16].mxu0 %vm909_vm4, %v907_v0  ;;  %v2757_v3 = vpop.f32.mrb[17].mxu1 }
 0x226   : > { %v1066_v4 = vpop.f32.mrb[18].mxu1  ;;  %2769 = vmatprep.mubr.msk.bf16.mxu0 %vm3332_vm1, %v3331_v17 }
 0x227   : > { %v1067_v5 = vadd.f32 %v2619_v63, %v1066_v4  ;;  %v2758_v6 = vpop.f32.mrb[19].mxu1  ;;  %v1086_v8 = vmax.f32 %v1064_v2, 0.0 }
 0x229   : > { %v1087_v9 = vmax.f32 %v1067_v5, 0.0 }
 0x22b   : > { %v1092_v10 = vpack.c.bf16 %v1087_v9, %v1086_v8  ;;  %v2645_v8 = vld [vmem:[%s4322_s14 + $0x3] ss:$0 sm:$0xff] }
 0x22c   : > { %v1071_v12 = vpop.f32.mrb[20].mxu1 }
 0x22d   : > { %v1072_v13 = vadd.f32 %v2619_v63, %v1071_v12  ;;  %v2761_v14 = vpop.f32.mrb[21].mxu1  ;;  %2770 = vmatmul.mubr.msk.bf16.vlgmr.msra.gmra.mrb[8].mxu0 %vm909_vm4, %v1092_v10 }
 0x22e   : > { %2796 = vmatpush3.bf16.msra.mxu0 %v1287_v11  ;;  %v1074_v15 = vpop.f32.mrb[22].mxu1  ;;  %2773 = vmatprep.mubr.msk.bf16.mxu0 %vm3332_vm1, %v3331_v17 }
 0x22f   : > { %v1075_v16 = vadd.f32 %v2619_v63, %v1074_v15  ;;  %v2762_v18 = vpop.f32.mrb[23].mxu1  ;;  %2823 = vmatprep.subr.bf16.mxu0 %v3331_v17  ;;  %v1088_v19 = vmax.f32 %v1072_v13, 0.0 }
 0x231   : > { %v1089_v20 = vmax.f32 %v1075_v16, 0.0 }
 0x233   : > { %v1093_v21 = vpack.c.bf16 %v1089_v20, %v1088_v19 }
 0x234   : > { %v1079_v22 = vpop.f32.mrb[24].mxu1 }
 0x235   : > { %v1080_v23 = vadd.f32 %v2619_v63, %v1079_v22  ;;  %v2765_v24 = vpop.f32.mrb[25].mxu1  ;;  %2774 = vmatmul.mubr.msk.bf16.gmra.mrb[12].mxu0 %vm909_vm4, %v1093_v21 }
 0x236   : > { %v1082_v25 = vpop.f32.mrb[26].mxu1  ;;  %2777 = vmatprep.mubr.msk.bf16.mxu0 %vm3332_vm1, %v3331_v17 }
 0x237   : > { %v1083_v26 = vadd.f32 %v2619_v63, %v1082_v25  ;;  %v2766_v27 = vpop.f32.mrb[27].mxu1  ;;  %v1090_v28 = vmax.f32 %v1080_v23, 0.0 }
 0x239   : > { %v1091_v29 = vmax.f32 %v1083_v26, 0.0 }
 0x23b   : > { %v1094_v31 = vpack.c.bf16 %v1091_v29, %v1090_v28 }
 0x23c   : > { %v1243_v33 = vpop.f32.mrb[28].mxu1 }
 0x23d   : > { %v1244_v34 = vadd.f32 %v2632_v30, %v1243_v33  ;;  %2778 = vmatmul.mubr.msk.bf16.gmra.mrb[16].mxu0 %vm909_vm4, %v1094_v31  ;;  %v2785_v36 = vpop.f32.mrb[29].mxu1 }
 0x23e   : > { %v1246_v37 = vpop.f32.mrb[30].mxu1  ;;  %2797 = vmatprep.mubr.msk.bf16.mxu0 %vm3332_vm1, %v3331_v17 }
 0x23f   : > { %v1247_v40 = vadd.f32 %v2632_v30, %v1246_v37  ;;  %v2786_v41 = vpop.f32.mrb[31].mxu1  ;;  %v1266_v43 = vmax.f32 %v1244_v34, 0.0 }
 0x241   : > { %v1267_v44 = vmax.f32 %v1247_v40, 0.0 }
 0x243   : > { %v1272_v45 = vpack.c.bf16 %v1267_v44, %v1266_v43 }
 0x244   : > { %v1251_v48 = vpop.f32.mrb[32].mxu1 }
 0x245   : > { %v1252_v49 = vadd.f32 %v2632_v30, %v1251_v48  ;;  %v2789_v51 = vpop.f32.mrb[33].mxu1  ;;  %2798 = vmatmul.mubr.msk.bf16.vlgmr.msra.gmra.mrb[8].mxu0 %vm909_vm4, %v1272_v45 }
 0x246   : > { %2824 = vmatpush3.bf16.msra.mxu0 %v1467_v46  ;;  %v1254_v54 = vpop.f32.mrb[34].mxu1  ;;  %2801 = vmatprep.mubr.msk.bf16.mxu0 %vm3332_vm1, %v3331_v17 }
 0x247   : > { %v1255_v59 = vadd.f32 %v2632_v30, %v1254_v54  ;;  %v2790_v60 = vpop.f32.mrb[35].mxu1  ;;  %v1268_v61 = vmax.f32 %v1252_v49, 0.0 }
 0x249   : > { %v1269_v62 = vmax.f32 %v1255_v59, 0.0 }
 0x24b   : > { %v1273_v63 = vpack.c.bf16 %v1269_v62, %v1268_v61 }
 0x24c   : > { %v1259_v0 = vpop.f32.mrb[36].mxu1 }
 0x24d   : > { %v1260_v1 = vadd.f32 %v2632_v30, %v1259_v0  ;;  %v2793_v2 = vpop.f32.mrb[37].mxu1  ;;  %2802 = vmatmul.mubr.msk.bf16.gmra.mrb[12].mxu0 %vm909_vm4, %v1273_v63 }
 0x24e   : > { %v1262_v3 = vpop.f32.mrb[38].mxu1  ;;  %2805 = vmatprep.mubr.msk.bf16.mxu0 %vm3332_vm1, %v3331_v17 }
 0x24f   : > { %v1263_v4 = vadd.f32 %v2632_v30, %v1262_v3  ;;  %v2794_v5 = vpop.f32.mrb[39].mxu1  ;;  %v1270_v6 = vmax.f32 %v1260_v1, 0.0 }
 0x251   : > { %v1271_v7 = vmax.f32 %v1263_v4, 0.0 }
 0x253   : > { %v1274_v9 = vpack.c.bf16 %v1271_v7, %v1270_v6 }
 0x254   : > { %v1423_v10 = vpop.f32.mrb[40].mxu1 }
 0x255   : > { %v1424_v11 = vadd.f32 %v2645_v8, %v1423_v10  ;;  %2806 = vmatmul.mubr.msk.bf16.gmra.mrb[16].mxu0 %vm909_vm4, %v1274_v9  ;;  %v2813_v12 = vpop.f32.mrb[41].mxu1 }
 0x256   : > { %v1426_v13 = vpop.f32.mrb[42].mxu1  ;;  %2825 = vmatprep.mubr.msk.bf16.mxu0 %vm3332_vm1, %v3331_v17 }
 0x257   : > { %v1427_v14 = vadd.f32 %v2645_v8, %v1426_v13  ;;  %v2814_v15 = vpop.f32.mrb[43].mxu1  ;;  %v1446_v16 = vmax.f32 %v1424_v11, 0.0 }
 0x259   : > { %v1447_v18 = vmax.f32 %v1427_v14, 0.0 }
 0x25b   : > { %v1452_v19 = vpack.c.bf16 %v1447_v18, %v1446_v16 }
 0x25c   : > { %v1431_v20 = vpop.f32.mrb[44].mxu1 }
 0x25d   : > { %v1432_v21 = vadd.f32 %v2645_v8, %v1431_v20  ;;  %v2817_v22 = vpop.f32.mrb[45].mxu1  ;;  %2826 = vmatmul.mubr.msk.bf16.vlgmr.msra.gmra.mrb[8].mxu0 %vm909_vm4, %v1452_v19 }
 0x25e   : > { %v1434_v23 = vpop.f32.mrb[46].mxu1  ;;  %2829 = vmatprep.mubr.msk.bf16.mxu0 %vm3332_vm1, %v3331_v17 }
 0x25f   : > { %v1448_v24 = vmax.f32 %v1432_v21, 0.0  ;;  %v1435_v25 = vadd.f32 %v2645_v8, %v1434_v23  ;;  %v2818_v26 = vpop.f32.mrb[47].mxu1 }
 0x261   : > { %v1449_v27 = vmax.f32 %v1435_v25, 0.0 }
 0x263   : > { %v1453_v28 = vpack.c.bf16 %v1449_v27, %v1448_v24 }
 0x264   : > { %v1439_v29 = vpop.f32.mrb[48].mxu1 }
 0x265   : > { %v1440_v30 = vadd.f32 %v2645_v8, %v1439_v29  ;;  %v2821_v31 = vpop.f32.mrb[49].mxu1  ;;  %2830 = vmatmul.mubr.msk.bf16.gmra.mrb[12].mxu0 %vm909_vm4, %v1453_v28 }
 0x266   : > { %v1442_v33 = vpop.f32.mrb[50].mxu1  ;;  %2833 = vmatprep.mubr.msk.bf16.mxu0 %vm3332_vm1, %v3331_v17 }
 0x267   : > { %v1450_v34 = vmax.f32 %v1440_v30, 0.0  ;;  %v1443_v36 = vadd.f32 %v2645_v8, %v1442_v33  ;;  %v2822_v37 = vpop.f32.mrb[51].mxu1 }
 0x269   : > { %v1451_v40 = vmax.f32 %v1443_v36, 0.0 }
 0x26b   : > { %v1454_v41 = vpack.c.bf16 %v1451_v40, %v1450_v34 }
 0x26d   : > { %2834 = vmatmul.mubr.msk.bf16.gmra.mrb[16].mxu0 %vm909_vm4, %v1454_v41 }
 0x330   : > { %v1503_v43 = vpop.f32.mrb[8].mxu0 }
 0x331   : > { %v3792_v44 = vadd.f32 %v2616_v42, %v1503_v43  ;;  %v2827_v45 = vpop.f32.mrb[9].mxu0 }
 0x332   : > { %v1506_v46 = vpop.f32.mrb[10].mxu0 }
 0x333   : > { %1538 = vrot.lane.b32.xlu0 %v3792_v44, %s3333_s24  ;;  %v2828_v17 = vpop.f32.mrb[11].mxu0  ;;  %v3796_v48 = vadd.f32 %v2616_v42, %v1506_v46 }
 0x337   : > { %1540 = vrot.lane.b32.xlu0 %v3796_v48, %s3333_s24 }
 0x338   : > { %v1511_v49 = vpop.f32.mrb[12].mxu0 }
 0x339   : > { %v3800_v51 = vadd.f32 %v2616_v42, %v1511_v49  ;;  %v2831_v54 = vpop.f32.mrb[13].mxu0 }
 0x33a   : > { %v1514_v59 = vpop.f32.mrb[14].mxu0 }
 0x33b   : > { %1542 = vrot.lane.b32.xlu1 %v3800_v51, %s3333_s24  ;;  %v2832_v60 = vpop.f32.mrb[15].mxu0  ;;  %v3804_v61 = vadd.f32 %v2616_v42, %v1514_v59 }
 0x33f   : > { %1544 = vrot.lane.b32.xlu1 %v3804_v61, %s3333_s24 }
 0x340   : > { %v1519_v62 = vpop.f32.mrb[16].mxu0 }
 0x341   : > { %v3808_v63 = vadd.f32 %v2616_v42, %v1519_v62  ;;  %v2835_v0 = vpop.f32.mrb[17].mxu0 }
 0x342   : > { %v1522_v1 = vpop.f32.mrb[18].mxu0 }
 0x343   : > { %v3810_v2 = vadd.f32 %v2616_v42, %v1522_v1  ;;  %1546 = vrot.lane.b32.xlu0 %v3808_v63, %s3333_s24  ;;  %v2836_v3 = vpop.f32.mrb[19].mxu0 }
 0x345   : > { %1548 = vrot.lane.b32.xlu1 %v3810_v2, %s3333_s24 }
 0x3a5   : > { %v1539_v4 = vpop.permute.xlu0 %1538 }
 0x3a6   : > { %v1556_v5 = vmax.f32 %v3792_v44, %v1539_v4 }
 0x3a8   : > { %1568 = vrot.lane.b32.xlu0 %v1556_v5, %s3334_s9 }
 0x3a9   : > { %v1541_v6 = vpop.permute.xlu0 %1540 }
 0x3aa   : > { %v1557_v7 = vmax.f32 %v3796_v48, %v1541_v6 }
 0x3ac   : > { %1570 = vrot.lane.b32.xlu1 %v1557_v7, %s3334_s9 }
 0x3ad   : > { %v1543_v8 = vpop.permute.xlu1 %1542 }
 0x3ae   : > { %v1558_v9 = vmax.f32 %v3800_v51, %v1543_v8 }
 0x3b0   : > { %1572 = vrot.lane.b32.xlu0 %v1558_v9, %s3334_s9 }
 0x3b1   : > { %v1545_v10 = vpop.permute.xlu1 %1544 }
 0x3b2   : > { %v1559_v11 = vmax.f32 %v3804_v61, %v1545_v10 }
 0x3b4   : > { %1574 = vrot.lane.b32.xlu1 %v1559_v11, %s3334_s9 }
 0x3b5   : > { %v1547_v12 = vpop.permute.xlu0 %1546 }
 0x3b6   : > { %v1560_v13 = vmax.f32 %v3808_v63, %v1547_v12 }
 0x3b7   : > { %v1549_v14 = vpop.permute.xlu1 %1548 }
 0x3b8   : > { %v1561_v15 = vmax.f32 %v3810_v2, %v1549_v14  ;;  %1576 = vrot.lane.b32.xlu0 %v1560_v13, %s3334_s9 }
 0x3ba   : > { %1578 = vrot.lane.b32.xlu1 %v1561_v15, %s3334_s9 }
 0x41a   : > { %v1569_v16 = vpop.permute.xlu0 %1568 }
 0x41b   : > { %v3828_v18 = vmax.f32 %v1556_v5, %v1569_v16 }
 0x41d   : > { %1616 = vrot.lane.b32.xlu0 %v3828_v18, %s3335_s20 }
 0x41e   : > { %v1571_v19 = vpop.permute.xlu1 %1570 }
 0x41f   : > { %v3832_v20 = vmax.f32 %v1557_v7, %v1571_v19 }
 0x421   : > { %1652 = vrot.lane.b32.xlu0 %v3828_v18, %s3336_s26  ;;  %1618 = vrot.lane.b32.xlu1 %v3832_v20, %s3335_s20 }
 0x422   : > { %v1573_v21 = vpop.permute.xlu0 %1572 }
 0x423   : > { %v3842_v22 = vmax.f32 %v1558_v9, %v1573_v21 }
 0x425   : > { %1688 = vrot.lane.b32.xlu0 %v3828_v18, %s3337_s18  ;;  %1654 = vrot.lane.b32.xlu1 %v3832_v20, %s3336_s26 }
 0x426   : > { %v1575_v23 = vpop.permute.xlu1 %1574 }
 0x427   : > { %v3848_v24 = vmax.f32 %v1559_v11, %v1575_v23 }
 0x429   : > { %1620 = vrot.lane.b32.xlu0 %v3842_v22, %s3335_s20  ;;  %1690 = vrot.lane.b32.xlu1 %v3832_v20, %s3337_s18 }
 0x42a   : > { %v1577_v25 = vpop.permute.xlu0 %1576 }
 0x42b   : > { %v3858_v26 = vmax.f32 %v1560_v13, %v1577_v25 }
 0x42c   : > { %v1579_v27 = vpop.permute.xlu1 %1578 }
 0x42d   : > { %1656 = vrot.lane.b32.xlu0 %v3842_v22, %s3336_s26  ;;  %1622 = vrot.lane.b32.xlu1 %v3848_v24, %s3335_s20  ;;  %v3864_v28 = vmax.f32 %v1561_v15, %v1579_v27 }
 0x431   : > { %1692 = vrot.lane.b32.xlu0 %v3842_v22, %s3337_s18  ;;  %1658 = vrot.lane.b32.xlu1 %v3848_v24, %s3336_s26 }
 0x435   : > { %1624 = vrot.lane.b32.xlu0 %v3858_v26, %s3335_s20  ;;  %1694 = vrot.lane.b32.xlu1 %v3848_v24, %s3337_s18 }
 0x439   : > { %1660 = vrot.lane.b32.xlu0 %v3858_v26, %s3336_s26  ;;  %1626 = vrot.lane.b32.xlu1 %v3864_v28, %s3335_s20 }
 0x43d   : > { %1696 = vrot.lane.b32.xlu0 %v3858_v26, %s3337_s18  ;;  %1662 = vrot.lane.b32.xlu1 %v3864_v28, %s3336_s26 }
 0x441   : > { %1698 = vrot.lane.b32.xlu1 %v3864_v28, %s3337_s18 }
 0x48f   : > { %v1617_v29 = vpop.permute.xlu0 %1616 }
 0x490   : > { %v1634_v30 = vsub.f32 %v3792_v44, %v1617_v29 }
 0x492   : > { %v1640_v31 = vmul.f32 1.442695, %v1634_v30 }
 0x493   : > { %v1653_v33 = vpop.permute.xlu0 %1652  ;;  %v1619_v34 = vpop.permute.xlu1 %1618 }
 0x494   : > { %3045 = vpow2.f32 %v1640_v31  ;;  %v1670_v36 = vsub.f32 %v3792_v44, %v1653_v33  ;;  %v1635_v37 = vsub.f32 %v3796_v48, %v1619_v34 }
 0x496   : > { %v1676_v40 = vmul.f32 1.442695, %v1670_v36  ;;  %v1642_v41 = vmul.f32 1.442695, %v1635_v37 }
 0x497   : > { %v1689_v42 = vpop.permute.xlu0 %1688  ;;  %v1655_v43 = vpop.permute.xlu1 %1654 }
 0x498   : > { %3047 = vpow2.f32 %v1676_v40  ;;  %v1706_v45 = vsub.f32 %v3792_v44, %v1689_v42  ;;  %v1671_v46 = vsub.f32 %v3796_v48, %v1655_v43 }
 0x499   : > { %3049 = vpow2.f32 %v1642_v41 }
 0x49a   : > { %v1712_v17 = vmul.f32 1.442695, %v1706_v45  ;;  %v1678_v49 = vmul.f32 1.442695, %v1671_v46 }
 0x49b   : > { %v1621_v54 = vpop.permute.xlu0 %1620  ;;  %v1691_v59 = vpop.permute.xlu1 %1690 }
 0x49c   : > { %3051 = vpow2.f32 %v1712_v17  ;;  %v1636_v60 = vsub.f32 %v3800_v51, %v1621_v54  ;;  %v1707_v62 = vsub.f32 %v3796_v48, %v1691_v59 }
 0x49d   : > { %3053 = vpow2.f32 %v1678_v49 }
 0x49e   : > { %v3883_v0 = vpop.eup %3045  ;;  %v1644_v1 = vmul.f32 1.442695, %v1636_v60  ;;  %v1714_v3 = vmul.f32 1.442695, %v1707_v62 }
 0x49f   : > { %1730 = vrot.lane.b32.xlu0 %v3883_v0, %s3333_s24  ;;  %v1657_v4 = vpop.permute.xlu0 %1656  ;;  %v1623_v5 = vpop.permute.xlu1 %1622 }
 0x4a0   : > { %3055 = vpow2.f32 %v1644_v1  ;;  %v1672_v6 = vsub.f32 %v3800_v51, %v1657_v4  ;;  %v1637_v7 = vsub.f32 %v3804_v61, %v1623_v5 }
 0x4a1   : > { %3057 = vpow2.f32 %v1714_v3 }
 0x4a2   : > { %v3889_v8 = vpop.eup %3047  ;;  %v1680_v9 = vmul.f32 1.442695, %v1672_v6  ;;  %v1646_v10 = vmul.f32 1.442695, %v1637_v7 }
 0x4a3   : > { %v3891_v11 = vpop.eup %3049  ;;  %1760 = vrot.lane.b32.xlu0 %v3889_v8, %s3334_s9  ;;  %v1693_v12 = vpop.permute.xlu0 %1692 }
 0x4a4   : > { %v1659_v13 = vpop.permute.xlu1 %1658  ;;  %3059 = vpow2.f32 %v1680_v9  ;;  %v1708_v14 = vsub.f32 %v3800_v51, %v1693_v12  ;;  %1732 = vrot.lane.b32.xlu1 %v3891_v11, %s3333_s24 }
 0x4a5   : > { %v1673_v15 = vsub.f32 %v3804_v61, %v1659_v13  ;;  %3061 = vpow2.f32 %v1646_v10 }
 0x4a6   : > { %v3899_v16 = vpop.eup %3051  ;;  %v1716_v19 = vmul.f32 1.442695, %v1708_v14 }
 0x4a7   : > { %v1682_v21 = vmul.f32 1.442695, %v1673_v15  ;;  %v3901_v23 = vpop.eup %3053  ;;  %1790 = vrot.lane.b32.xlu0 %v3899_v16, %s3338_s16  ;;  %v1625_v25 = vpop.permute.xlu0 %1624 }
 0x4a8   : > { %v1695_v27 = vpop.permute.xlu1 %1694  ;;  %3063 = vpow2.f32 %v1716_v19  ;;  %v1638_v29 = vsub.f32 %v3808_v63, %v1625_v25  ;;  %1762 = vrot.lane.b32.xlu1 %v3901_v23, %s3334_s9  ;;  %v1592_v25 = vsub.f32 %v3792_v44, %v3828_v18 }
 0x4a9   : > { %v1709_v30 = vsub.f32 %v3804_v61, %v1695_v27  ;;  %3065 = vpow2.f32 %v1682_v21  ;;  %v3339_v21 = vmov 0  }
 0x4aa   : > { %v3909_v31 = vpop.eup %3055  ;;  %v1648_v33 = vmul.f32 1.442695, %v1638_v29  ;;  %3018 = vset.pattern.permute.xlu0 %v3339_v21  ;;  %3019 = vset.pattern.permute.xlu1 %v3339_v21  ;;  %v1598_v27 = vmul.f32 1.442695, %v1592_v25  ;;  %v1593_v29 = vsub.f32 %v3796_v48, %v3832_v20 }
 0x4ab   : > { %v1718_v34 = vmul.f32 1.442695, %v1709_v30  ;;  %v3911_v36 = vpop.eup %3057  ;;  %1734 = vrot.lane.b32.xlu0 %v3909_v31, %s3333_s24  ;;  %v1661_v37 = vpop.permute.xlu0 %1660 }
 0x4ac   : > { %v1627_v40 = vpop.permute.xlu1 %1626  ;;  %3067 = vpow2.f32 %v1648_v33  ;;  %v1674_v41 = vsub.f32 %v3808_v63, %v1661_v37  ;;  %1792 = vrot.lane.b32.xlu1 %v3911_v36, %s3338_s16  ;;  %v1600_v30 = vmul.f32 1.442695, %v1593_v29  ;;  %v1594_v33 = vsub.f32 %v3800_v51, %v3842_v22 }
 0x4ad   : > { %v1639_v42 = vsub.f32 %v3810_v2, %v1627_v40  ;;  %3069 = vpow2.f32 %v1718_v34  ;;  %v1595_v40 = vsub.f32 %v3804_v61, %v3848_v24  ;;  %v1596_v22 = vsub.f32 %v3808_v63, %v3858_v26 }
 0x4ae   : > { %v3919_v43 = vpop.eup %3059  ;;  %v1684_v45 = vmul.f32 1.442695, %v1674_v41  ;;  %v1602_v37 = vmul.f32 1.442695, %v1594_v33 }
 0x4af   : > { %v1650_v46 = vmul.f32 1.442695, %v1639_v42  ;;  %v3921_v17 = vpop.eup %3061  ;;  %1764 = vrot.lane.b32.xlu0 %v3919_v43, %s3334_s9  ;;  %v1697_v49 = vpop.permute.xlu0 %1696 }
 0x4b0   : > { %v1663_v54 = vpop.permute.xlu1 %1662  ;;  %3071 = vpow2.f32 %v1684_v45  ;;  %v1710_v59 = vsub.f32 %v3808_v63, %v1697_v49  ;;  %1736 = vrot.lane.b32.xlu1 %v3921_v17, %s3333_s24  ;;  %v1604_v45 = vmul.f32 1.442695, %v1595_v40 }
 0x4b1   : > { %v1675_v60 = vsub.f32 %v3810_v2, %v1663_v54  ;;  %3073 = vpow2.f32 %v1650_v46 }
 0x4b2   : > { %v3929_v62 = vpop.eup %3063  ;;  %v1720_v1 = vmul.f32 1.442695, %v1710_v59 }
 0x4b3   : > { %v1686_v3 = vmul.f32 1.442695, %v1675_v60  ;;  %v3931_v4 = vpop.eup %3065  ;;  %1794 = vrot.lane.b32.xlu0 %v3929_v62, %s3338_s16  ;;  %v1606_v60 = vmul.f32 1.442695, %v1596_v22 }
 0x4b4   : > { %v1699_v5 = vpop.permute.xlu1 %1698  ;;  %3075 = vpow2.f32 %v1720_v1  ;;  %1766 = vrot.lane.b32.xlu1 %v3931_v4, %s3334_s9  ;;  %v1597_v1 = vsub.f32 %v3810_v2, %v3864_v28 }
 0x4b5   : > { %v1711_v6 = vsub.f32 %v3810_v2, %v1699_v5  ;;  %3077 = vpow2.f32 %v1686_v3 }
 0x4b6   : > { %v3938_v7 = vpop.eup %3067  ;;  %v1608_v63 = vmul.f32 1.442695, %v1597_v1 }
 0x4b7   : > { %v1722_v9 = vmul.f32 1.442695, %v1711_v6  ;;  %v3940_v10 = vpop.eup %3069  ;;  %1738 = vrot.lane.b32.xlu0 %v3938_v7, %s3333_s24 }
 0x4b8   : > { %1796 = vrot.lane.b32.xlu1 %v3940_v10, %s3338_s16 }
 0x4b9   : > { %3079 = vpow2.f32 %v1722_v9 }
 0x4ba   : > { %v3946_v12 = vpop.eup %3071  ;;  %3081 = vpow2.f32 %v1598_v27 }
 0x4bb   : > { %v3948_v13 = vpop.eup %3073  ;;  %1768 = vrot.lane.b32.xlu0 %v3946_v12, %s3334_s9  ;;  %3083 = vpow2.f32 %v1600_v30 }
 0x4bc   : > { %1740 = vrot.lane.b32.xlu1 %v3948_v13, %s3333_s24  ;;  %3085 = vpow2.f32 %v1602_v37 }
 0x4bd   : > { %3087 = vpow2.f32 %v1604_v45 }
 0x4be   : > { %v3954_v14 = vpop.eup %3075 }
 0x4bf   : > { %v3956_v15 = vpop.eup %3077  ;;  %1798 = vrot.lane.b32.xlu0 %v3954_v14, %s3338_s16 }
 0x4c0   : > { %1770 = vrot.lane.b32.xlu1 %v3956_v15, %s3334_s9 }
 0x4c3   : > { %v3962_v19 = vpop.eup %3079 }
 0x4c4   : > { %1800 = vrot.lane.b32.xlu1 %v3962_v19, %s3338_s16  ;;  %v3974_v41 = vpop.eup %3081 }
 0x4c5   : > { %v3977_v46 = vpop.eup %3083 }
 0x4c6   : > { %v3984_v5 = vpop.eup %3085 }
 0x4c7   : > { %v3088_v25 = vpop.eup %3087 }
 0x511   : > { %v1731_v34 = vpop.permute.xlu0 %1730 }
 0x512   : > { %v1748_v44 = vadd.f32 %v3974_v41, %v1731_v34 }
 0x515   : > { %v1761_v42 = vpop.permute.xlu0 %1760 }
 0x516   : > { %v1733_v18 = vpop.permute.xlu1 %1732  ;;  %v1778_v48 = vadd.f32 %v1761_v42, %v1748_v44 }
 0x517   : > { %v1749_v61 = vadd.f32 %v3977_v46, %v1733_v18 }
 0x519   : > { %v1791_v20 = vpop.permute.xlu0 %1790 }
 0x51a   : > { %v1808_v49 = vadd.f32 %v1791_v20, %v1778_v48  ;;  %v1763_v51 = vpop.permute.xlu1 %1762 }
 0x51b   : > { %v1779_v24 = vadd.f32 %v1763_v51, %v1749_v61 }
 0x51c   : > { %3089 = vrcp.f32 %v1808_v49 }
 0x51d   : > { %v1735_v54 = vpop.permute.xlu0 %1734 }
 0x51e   : > { %v1793_v59 = vpop.permute.xlu1 %1792  ;;  %v1750_v9 = vadd.f32 %v3984_v5, %v1735_v54 }
 0x51f   : > { %v1809_v3 = vadd.f32 %v1793_v59, %v1779_v24 }
 0x521   : > { %3091 = vrcp.f32 %v1809_v3  ;;  %v1765_v6 = vpop.permute.xlu0 %1764 }
 0x522   : > { %v1737_v21 = vpop.permute.xlu1 %1736  ;;  %3093 = vpow2.f32 %v1606_v60  ;;  %v1780_v26 = vadd.f32 %v1765_v6, %v1750_v9 }
 0x523   : > { %3095 = vpow2.f32 %v1608_v63  ;;  %v1751_v34 = vadd.f32 %v3088_v25, %v1737_v21 }
 0x525   : > { %v1795_v27 = vpop.permute.xlu0 %1794 }
 0x526   : > { %v3090_v29 = vpop.eup %3089  ;;  %v1810_v30 = vadd.f32 %v1795_v27, %v1780_v26  ;;  %v1767_v33 = vpop.permute.xlu1 %1766 }
 0x527   : > { %1832 = vrot.lane.b32.xlu0 %v3090_v29, %s3335_s20  ;;  %v1781_v2 = vadd.f32 %v1767_v33, %v1751_v34  ;;  %v1820_v21 = vmul.f32 %v3090_v29, %v3974_v41  ;;  %v3340_v34 = vmov 2  }
 0x528   : > { %3097 = vrcp.f32 %v1810_v30 }
 0x529   : > { %v1739_v28 = vpop.permute.xlu0 %1738 }
 0x52a   : > { %v1797_v37 = vpop.permute.xlu1 %1796 }
 0x52b   : > { %v3092_v40 = vpop.eup %3091  ;;  %v1811_v42 = vadd.f32 %v1797_v37, %v1781_v2  ;;  %1856 = vrot.lane.b32.xlu0 %v3090_v29, %s3336_s26  ;;  %v3341_v2 = vmov 1  }
 0x52c   : > { %1834 = vrot.lane.b32.xlu1 %v3092_v40, %s3335_s20  ;;  %v3094_v44 = vpop.eup %3093  ;;  %v1821_v26 = vmul.f32 %v3092_v40, %v3977_v46 }
 0x52d   : > { %3099 = vrcp.f32 %v1811_v42  ;;  %v1769_v18 = vpop.permute.xlu0 %1768  ;;  %v1752_v45 = vadd.f32 %v3094_v44, %v1739_v28  ;;  %v3096_v49 = vpop.eup %3095 }
 0x52e   : > { %v1741_v48 = vpop.permute.xlu1 %1740 }
 0x52f   : > { %1880 = vrot.lane.b32.xlu0 %v3090_v29, %s3337_s18  ;;  %v1782_v20 = vadd.f32 %v1769_v18, %v1752_v45  ;;  %v1753_v54 = vadd.f32 %v3096_v49, %v1741_v48 }
 0x530   : > { %1858 = vrot.lane.b32.xlu1 %v3092_v40, %s3336_s26 }
 0x531   : > { %v1799_v51 = vpop.permute.xlu0 %1798 }
 0x532   : > { %v3098_v22 = vpop.eup %3097  ;;  %v1812_v61 = vadd.f32 %v1799_v51, %v1782_v20  ;;  %v1771_v24 = vpop.permute.xlu1 %1770 }
 0x533   : > { %1836 = vrot.lane.b32.xlu0 %v3098_v22, %s3335_s20  ;;  %v1783_v59 = vadd.f32 %v1771_v24, %v1753_v54  ;;  %v1822_v30 = vmul.f32 %v3098_v22, %v3984_v5  ;;  %v3342_v5 = vmov 3  }
 0x534   : > { %3101 = vrcp.f32 %v1812_v61  ;;  %1882 = vrot.lane.b32.xlu1 %v3092_v40, %s3337_s18 }
 0x536   : > { %v1801_v60 = vpop.permute.xlu1 %1800 }
 0x537   : > { %v3100_v1 = vpop.eup %3099  ;;  %v1813_v3 = vadd.f32 %v1801_v60, %v1783_v59  ;;  %1860 = vrot.lane.b32.xlu0 %v3098_v22, %s3336_s26 }
 0x538   : > { %1838 = vrot.lane.b32.xlu1 %v3100_v1, %s3335_s20  ;;  %v1823_v63 = vmul.f32 %v3100_v1, %v3088_v25 }
 0x539   : > { %3103 = vrcp.f32 %v1813_v3 }
 0x53b   : > { %1884 = vrot.lane.b32.xlu0 %v3098_v22, %s3337_s18 }
 0x53c   : > { %1862 = vrot.lane.b32.xlu1 %v3100_v1, %s3336_s26 }
 0x53e   : > { %v3102_v6 = vpop.eup %3101 }
 0x53f   : > { %1840 = vrot.lane.b32.xlu0 %v3102_v6, %s3335_s20  ;;  %v1824_v33 = vmul.f32 %v3102_v6, %v3094_v44 }
 0x540   : > { %1886 = vrot.lane.b32.xlu1 %v3100_v1, %s3337_s18 }
 0x543   : > { %v3104_v9 = vpop.eup %3103  ;;  %1864 = vrot.lane.b32.xlu0 %v3102_v6, %s3336_s26 }
 0x544   : > { %1842 = vrot.lane.b32.xlu1 %v3104_v9, %s3335_s20  ;;  %v1825_v27 = vmul.f32 %v3104_v9, %v3096_v49 }
 0x547   : > { %1888 = vrot.lane.b32.xlu0 %v3102_v6, %s3337_s18 }
 0x548   : > { %1866 = vrot.lane.b32.xlu1 %v3104_v9, %s3336_s26 }
 0x54b   : > { %1906 = vperm.xlu0 %3018, %v1820_v21   ;;  %v3105_v21 = vld [vmem:[%s3603_s8 + $0x4] sm:$0xf] }
 0x54c   : > { %1890 = vrot.lane.b32.xlu1 %v3104_v9, %s3337_s18 }
 0x54f   : > { %1921 = vperm.xlu0 %3018, %v1823_v63  }
 0x550   : > { %1911 = vperm.xlu1 %3019, %v1821_v26  }
 0x553   : > { %1931 = vperm.xlu0 %3018, %v1825_v27   ;;  %v3106_v27 = vld [vmem:[%s3603_s8 + $0x8] sm:$0xf] }
 0x554   : > { %1916 = vperm.xlu1 %3019, %v1822_v30   ;;  %v1988_v30 = vunpack.c.l.bf16 %v3106_v27 }
 0x557   : > { %3021 = vset.pattern.permute.xlu0 %v3340_v34 }
 0x558   : > { %1926 = vperm.xlu1 %3019, %v1824_v33  }
 0x55c   : > { %3020 = vset.pattern.permute.xlu1 %v3341_v2 }
 0x599   : > { %v1833_v41 = vpop.permute.xlu0 %1832 }
 0x59a   : > { %v1850_v25 = vmul.f32 %v3883_v0, %v1833_v41  ;;  %v3107_v41 = vld [vmem:[%s3603_s8 + $0xc] sm:$0xf]  ;;  %s4324_s8 = sld [smem:[#allocation9_spill]] }
 0x59c   : > { %1948 = vperm.xlu1 %3020, %v1850_v25   ;;  %v2036_v25 = vunpack.c.l.bf16 %v3107_v41 }
 0x59d   : > { %v1857_v46 = vpop.permute.xlu0 %1856 }
 0x59e   : > { %v1874_v29 = vmul.f32 %v3889_v8, %v1857_v46  ;;  %v1835_v28 = vpop.permute.xlu1 %1834  ;;  %v3108_v46 = vld [vmem:[%s3598_s12 + $0x10] sm:$0xf] }
 0x59f   : > { %v1851_v44 = vmul.f32 %v3891_v11, %v1835_v28 }
 0x5a0   : > { %1996 = vperm.xlu0 %3021, %v1874_v29   ;;  %3022 = vset.pattern.permute.xlu1 %v3342_v5  ;;  %v1941_v29 = vunpack.c.l.bf16 %v3108_v46  ;;  %v3114_v46 = vld [vmem:[%s3598_s12 + $0x1c] sm:$0xf]  ;;  %p2656_p11 = scmp.ne.s32.totalorder %s4324_s8, 0 }
 0x5a1   : > { %v1881_v37 = vpop.permute.xlu0 %1880 }
 0x5a2   : > { %v1898_v40 = vmul.f32 %v3899_v16, %v1881_v37  ;;  %v1859_v42 = vpop.permute.xlu1 %1858 }
 0x5a3   : > { %v1875_v45 = vmul.f32 %v3901_v23, %v1859_v42 }
 0x5a4   : > { %2044 = vperm.xlu1 %3022, %v1898_v40   ;;  %3023 = vset.pattern.permute.xlu0 %v3341_v2 }
 0x5a5   : > { %v1837_v18 = vpop.permute.xlu0 %1836  ;;  %1953 = vperm.xlu0 %3023, %v1851_v44  }
 0x5a6   : > { %v1883_v0 = vpop.permute.xlu1 %1882  ;;  %v1852_v16 = vmul.f32 %v3909_v31, %v1837_v18  ;;  %v3109_v18 = vld [vmem:[%s3598_s12 + $0x20] sm:$0xf] }
 0x5a7   : > { %v1899_v8 = vmul.f32 %v3911_v36, %v1883_v0  ;;  %v1989_v0 = vunpack.c.l.bf16 %v3109_v18 }
 0x5a8   : > { %3024 = vset.pattern.permute.xlu1 %v3340_v34 }
 0x5a9   : > { %v1861_v48 = vpop.permute.xlu0 %1860  ;;  %3025 = vset.pattern.permute.xlu0 %v3342_v5  ;;  %2001 = vperm.xlu1 %3024, %v1875_v45  }
 0x5aa   : > { %v1839_v20 = vpop.permute.xlu1 %1838  ;;  %2049 = vperm.xlu0 %3025, %v1899_v8   ;;  %v1876_v36 = vmul.f32 %v3919_v43, %v1861_v48  ;;  %v3110_v8 = vld [vmem:[%s3598_s12 + $0x30] sm:$0xf] }
 0x5ab   : > { %v1853_v43 = vmul.f32 %v3921_v17, %v1839_v20  ;;  %v2037_v48 = vunpack.c.l.bf16 %v3110_v8 }
 0x5ad   : > { %v1885_v11 = vpop.permute.xlu0 %1884  ;;  %3026 = vset.pattern.permute.xlu1 %v3341_v2 }
 0x5ae   : > { %v1863_v49 = vpop.permute.xlu1 %1862  ;;  %1958 = vperm.xlu1 %3026, %v1852_v16   ;;  %3030 = vset.pattern.permute.xlu0 %v3340_v34  ;;  %v1900_v31 = vmul.f32 %v3929_v62, %v1885_v11 }
 0x5af   : > { %v1877_v23 = vmul.f32 %v3931_v4, %v1863_v49 }
 0x5b1   : > { %2011 = vperm.xlu0 %3030, %v1877_v23   ;;  %v1841_v51 = vpop.permute.xlu0 %1840 }
 0x5b2   : > { %v1854_v22 = vmul.f32 %v3938_v7, %v1841_v51  ;;  %v1887_v61 = vpop.permute.xlu1 %1886  ;;  %3027 = vset.pattern.permute.xlu1 %v3340_v34 }
 0x5b3   : > { %2006 = vperm.xlu1 %3027, %v1876_v36   ;;  %v1901_v60 = vmul.f32 %v3940_v10, %v1887_v61  ;;  %v3111_v61 = vld [vmem:[%s3598_s12 + $0x14] sm:$0xff]  }
 0x5b5   : > { %3032 = vset.pattern.permute.xlu0 %v3341_v2  ;;  %v1865_v54 = vpop.permute.xlu0 %1864 }
 0x5b6   : > { %1968 = vperm.xlu0 %3032, %v1854_v22   ;;  %v1843_v24 = vpop.permute.xlu1 %1842  ;;  %v1878_v1 = vmul.f32 %v3946_v12, %v1865_v54  ;;  %v3112_v54 = vld [vmem:[%s3598_s12 + $0x24] sm:$0xff]  }
 0x5b7   : > { %3028 = vset.pattern.permute.xlu1 %v3342_v5  ;;  %v1855_v17 = vmul.f32 %v3948_v13, %v1843_v24  ;;  %v1940_v13 = vunpack.c.l.bf16 %v3105_v21 }
 0x5b8   : > { %2054 = vperm.xlu1 %3028, %v1900_v31   ;;  %v1942_v31 = vunpack.c.l.bf16 %v3111_v61 }
 0x5b9   : > { %v1889_v59 = vpop.permute.xlu0 %1888 }
 0x5ba   : > { %v1867_v4 = vpop.permute.xlu1 %1866  ;;  %3035 = vset.pattern.permute.xlu0 %v3340_v34  ;;  %v1902_v62 = vmul.f32 %v3954_v14, %v1889_v59 }
 0x5bb   : > { %v1879_v7 = vmul.f32 %v3956_v15, %v1867_v4  ;;  %v1990_v4 = vunpack.c.l.bf16 %v3112_v54 }
 0x5bc   : > { %3029 = vset.pattern.permute.xlu1 %v3341_v2 }
 0x5bd   : > { %2021 = vperm.xlu0 %3035, %v1879_v7   ;;  %1963 = vperm.xlu1 %3029, %v1853_v43  }
 0x5be   : > { %v1891_v15 = vpop.permute.xlu1 %1890 }
 0x5bf   : > { %v1903_v10 = vmul.f32 %v3962_v19, %v1891_v15 }
 0x5c1   : > { %3036 = vset.pattern.permute.xlu0 %v3342_v5  ;;  %3031 = vset.pattern.permute.xlu1 %v3342_v5 }
 0x5c2   : > { %2064 = vperm.xlu0 %3036, %v1902_v62   ;;  %2059 = vperm.xlu1 %3031, %v1901_v60  }
 0x5c6   : > { %3033 = vset.pattern.permute.xlu1 %v3340_v34 }
 0x5c7   : > { %2016 = vperm.xlu1 %3033, %v1878_v1  }
 0x5ca   : > { %v1907_v3 = vpop.permute.xlu0 %1906 }
 0x5cb   : > { %3034 = vset.pattern.permute.xlu1 %v3341_v2  ;;  %v1934_v34 = vmul.f32 %v1907_v3, %v812_v38 }
 0x5cc   : > { %1973 = vperm.xlu1 %3034, %v1855_v17   ;;  %v3113_v17 = vld [vmem:[%s3598_s12 + $0x34] sm:$0xff]  }
 0x5cd   : > { %v2038_v15 = vunpack.c.l.bf16 %v3113_v17  ;;  %v2039_v41 = vunpack.c.h.bf16 %v3113_v17  ;;  %v3343_v17 = vmov (!%p2656_p11), 0.0  }
 0x5ce   : > { %v4038_v12 = vpop.permute.xlu0 %1921 }
 0x5cf   : > { %v1912_v14 = vpop.permute.xlu1 %1911  ;;  %v1937_v47 = vmul.f32 %v4038_v12, %v815_v53 }
 0x5d0   : > { %3037 = vset.pattern.permute.xlu1 %v3342_v5  ;;  %v1935_v32 = vmul.f32 %v1912_v14, %v813_v39 }
 0x5d1   : > { %2069 = vperm.xlu1 %3037, %v1903_v10  }
 0x5d2   : > { %v4043_v63 = vpop.permute.xlu0 %1931 }
 0x5d3   : > { %v1917_v6 = vpop.permute.xlu1 %1916 }
 0x5d4   : > { %v1936_v62 = vmul.f32 %v1917_v6, %v814_v52 }
 0x5d7   : > { %v4040_v9 = vpop.permute.xlu1 %1926 }
 0x5d8   : > { %v1938_v18 = vmul.f32 %v4040_v9, %v816_v57  ;;  %v3118_v57 = vld [vmem:[%s3613_s30 + $0x8] sm:$0xf] }
 0x5d9   : > { %v1993_v9 = vunpack.c.l.bf16 %v3118_v57 }
 0x61b   : > { %v1949_v26 = vpop.permute.xlu1 %1948 }
 0x61c   : > { %v1976_v19 = vmul.f32 %v1949_v26, %v1940_v13  ;;  %v1943_v26 = vunpack.c.h.bf16 %v3111_v61 }
 0x61e   : > { %v1982_v28 = vadd.f32 %v1976_v19, %v1934_v34 }
 0x61f   : > { %v1997_v33 = vpop.permute.xlu0 %1996 }
 0x620   : > { %v2024_v2 = vmul.f32 %v1997_v33, %v1988_v30  ;;  %v1991_v30 = vunpack.c.h.bf16 %v3112_v54 }
 0x622   : > { %v2030_v37 = vadd.f32 %v2024_v2, %v1982_v28 }
 0x623   : > { %v2045_v5 = vpop.permute.xlu1 %2044 }
 0x624   : > { %v2072_v40 = vmul.f32 %v2045_v5, %v2036_v25  ;;  %v1954_v42 = vpop.permute.xlu0 %1953 }
 0x625   : > { %v1977_v44 = vmul.f32 %v1954_v42, %v1941_v29  ;;  %v1944_v29 = vunpack.c.l.bf16 %v3114_v46 }
 0x626   : > { %v2078_v45 = vadd.f32 %v2072_v40, %v2030_v37  ;;  %v3115_v40 = vld [vmem:[%s3598_s12 + $0x2c] sm:$0xf] }
 0x627   : > { %v1983_v16 = vadd.f32 %v1977_v44, %v1935_v32  ;;  %v1992_v42 = vunpack.c.l.bf16 %v3115_v40 }
 0x628   : > { %v2090_v38 = vrot.slane %v2078_v45, 7  ;;  %v2002_v20 = vpop.permute.xlu1 %2001 }
 0x629   : > { %v2025_v11 = vmul.f32 %v2002_v20, %v1989_v0  ;;  %v2050_v49 = vpop.permute.xlu0 %2049  ;;  %v3116_v0 = vld [vmem:[%s3598_s12 + $0x3c] sm:$0xf]  ;;  %s4100_s12 = scalar_lea.vmem [#allocation6], %s2601_s29 }
 0x62a   : > { %v2103_v23 = vsel %vm2102_vm5, 0.0, %v2090_v38  ;;  %v2109_v36 = vsel %vm2102_vm5, %v2090_v38, 0.0  ;;  %v2073_v51 = vmul.f32 %v2050_v49, %v2037_v48  ;;  %v2040_v45 = vunpack.c.l.bf16 %v3116_v0  ;;  %v3117_v49 = vld [vmem:[%s3613_s30 + $0x4] sm:$0xf] }
 0x62b   : > { %2115 = vst.msk [vmem:[#allocation2] sm:$0xff] %vm741_vm2, %v2103_v23  ;;  %v2031_v35 = vadd.f32 %v2025_v11, %v1983_v16  ;;  %v1945_v23 = vunpack.c.l.bf16 %v3117_v49 }
 0x62c   : > { %2117 = vst.msk [vmem:[#allocation2 + $0x8] sm:$0x3] %vm2116_vm6, %v2109_v36 }
 0x62d   : > { %v2079_v39 = vadd.f32 %v2073_v51, %v2031_v35  ;;  %v1959_v22 = vpop.permute.xlu1 %1958  ;;  %2132 = vst.msk [vmem:[#allocation2] sm:$0xff] (!%p2656_p11), %vm741_vm2, %v3343_v17 }
 0x62e   : > { %v1978_v59 = vmul.f32 %v1959_v22, %v1942_v31  ;;  %v3119_v31 = vld [vmem:[%s3613_s30 + $0xc] sm:$0xf]  ;;  %2133 = vst.msk [vmem:[#allocation2 + $0x8] sm:$0x3] (!%p2656_p11), %vm2116_vm6, %v3343_v17 }
 0x62f   : > { %v2091_v24 = vrot.slane %v2079_v39, 7  ;;  %v1939_v39 = vmul.f32 %v4043_v63, %v817_v58 }
 0x630   : > { %v1984_v10 = vadd.f32 %v1978_v59, %v1936_v62  ;;  %v2012_v14 = vpop.permute.xlu0 %2011 }
 0x631   : > { %v2104_v43 = vsel %vm2102_vm5, 0.0, %v2091_v24  ;;  %v2110_v7 = vsel %vm2102_vm5, %v2091_v24, 0.0  ;;  %v2027_v25 = vmul.f32 %v2012_v14, %v1991_v30  ;;  %v2041_v24 = vunpack.c.l.bf16 %v3119_v31 }
 0x632   : > { %2118 = vst.msk [vmem:[#allocation2 + $0x10] sm:$0xff] %vm741_vm2, %v2104_v43  ;;  %v2007_v60 = vpop.permute.xlu1 %2006 }
 0x633   : > { %2119 = vst.msk [vmem:[#allocation2 + $0x18] sm:$0x3] %vm2116_vm6, %v2110_v7  ;;  %v2026_v1 = vmul.f32 %v2007_v60, %v1990_v4 }
 0x635   : > { %v2032_v21 = vadd.f32 %v2026_v1, %v1984_v10  ;;  %v1969_v19 = vpop.permute.xlu0 %1968 }
 0x636   : > { %v1980_v12 = vmul.f32 %v1969_v19, %v1944_v29 }
 0x637   : > { %v2055_v3 = vpop.permute.xlu1 %2054 }
 0x638   : > { %v2074_v13 = vmul.f32 %v2055_v3, %v2038_v15  ;;  %v1986_v38 = vadd.f32 %v1980_v12, %v1938_v18 }
 0x63a   : > { %v2080_v27 = vadd.f32 %v2074_v13, %v2032_v21 }
 0x63c   : > { %v2092_v33 = vrot.slane %v2080_v27, 7  ;;  %v1964_v34 = vpop.permute.xlu1 %1963  ;;  %v2022_v5 = vpop.permute.xlu0 %2021 }
 0x63d   : > { %v1979_v52 = vmul.f32 %v1964_v34, %v1943_v26  ;;  %v2029_v54 = vmul.f32 %v2022_v5, %v1993_v9 }
 0x63e   : > { %v2105_v6 = vsel %vm2102_vm5, 0.0, %v2092_v33  ;;  %v2111_v2 = vsel %vm2102_vm5, %v2092_v33, 0.0 }
 0x63f   : > { %2120 = vst.msk [vmem:[#allocation2 + $0x20] sm:$0xff] %vm741_vm2, %v2105_v6  ;;  %v1985_v28 = vadd.f32 %v1979_v52, %v1937_v47 }
 0x640   : > { %2121 = vst.msk [vmem:[#allocation2 + $0x28] sm:$0x3] %vm2116_vm6, %v2111_v2 }
 0x641   : > { %v2033_v50 = vadd.f32 %v2027_v25, %v1985_v28  ;;  %v2060_v37 = vpop.permute.xlu1 %2059  ;;  %v2065_v8 = vpop.permute.xlu0 %2064 }
 0x642   : > { %v2075_v53 = vmul.f32 %v2060_v37, %v2039_v41  ;;  %v2076_v36 = vmul.f32 %v2065_v8, %v2040_v45 }
 0x644   : > { %v2081_v44 = vadd.f32 %v2075_v53, %v2033_v50 }
 0x646   : > { %v2093_v48 = vrot.slane %v2081_v44, 7  ;;  %v2017_v32 = vpop.permute.xlu1 %2016 }
 0x647   : > { %v2028_v20 = vmul.f32 %v2017_v32, %v1992_v42 }
 0x648   : > { %v2106_v16 = vsel %vm2102_vm5, 0.0, %v2093_v48  ;;  %v2112_v11 = vsel %vm2102_vm5, %v2093_v48, 0.0 }
 0x649   : > { %2122 = vst.msk [vmem:[#allocation2 + $0x30] sm:$0xff] %vm741_vm2, %v2106_v16  ;;  %v2034_v55 = vadd.f32 %v2028_v20, %v1986_v38 }
 0x64a   : > { %2123 = vst.msk [vmem:[#allocation2 + $0x38] sm:$0x3] %vm2116_vm6, %v2112_v11 }
 0x64b   : > { %v2082_v51 = vadd.f32 %v2076_v36, %v2034_v55  ;;  %v1974_v35 = vpop.permute.xlu1 %1973 }
 0x64c   : > { %v1981_v22 = vmul.f32 %v1974_v35, %v1945_v23 }
 0x64d   : > { %v2094_v61 = vrot.slane %v2082_v51, 7 }
 0x64e   : > { %v1987_v4 = vadd.f32 %v1981_v22, %v1939_v39 }
 0x64f   : > { %v2107_v43 = vsel %vm2102_vm5, 0.0, %v2094_v61  ;;  %v2113_v7 = vsel %vm2102_vm5, %v2094_v61, 0.0 }
 0x650   : > { %2124 = vst.msk [vmem:[#allocation2 + $0x40] sm:$0xff] %vm741_vm2, %v2107_v43  ;;  %v2035_v59 = vadd.f32 %v2029_v54, %v1987_v4  ;;  %v2070_v60 = vpop.permute.xlu1 %2069 }
 0x651   : > { %2125 = vst.msk [vmem:[#allocation2 + $0x48] sm:$0x3] %vm2116_vm6, %v2113_v7  ;;  %v2077_v56 = vmul.f32 %v2070_v60, %v2041_v24 }
 0x653   : > { %v2083_v62 = vadd.f32 %v2077_v56, %v2035_v59  ;;  %2131 = sbr.rel (%p2656_p11) target bundleno = 1626 (0x65a), region = 191 }
 0x655   : > { %v2095_v58 = vrot.slane %v2083_v62, 7 }
 0x657   : > { %v2108_v63 = vsel %vm2102_vm5, 0.0, %v2095_v58  ;;  %v2114_v1 = vsel %vm2102_vm5, %v2095_v58, 0.0 }
 0x658   : > { %2126 = vst.msk [vmem:[#allocation2 + $0x50] sm:$0xff] %vm741_vm2, %v2108_v63 }
 0x659   : > { %2127 = vst.msk [vmem:[#allocation2 + $0x58] sm:$0x3] %vm2116_vm6, %v2114_v1 }
 0x65a PF: > { %s4325_s30 = sld [smem:[#allocation9_spill]] }
 0x660   : > { %p2657_p12 = scmp.ne.s32.totalorder %s4325_s30, 1 }
 0x661   : > { %v3344_v15 = vmov (!%p2657_p12), 0.0  }
 0x662   : > { %2137 = sbr.rel (%p2657_p12) target bundleno = 1641 (0x669), region = 195  ;;  %2139 = vst.msk [vmem:[#allocation2 + $0x50] sm:$0xff] (!%p2657_p12), %vm741_vm2, %v3344_v15 }
 0x663   : > { %2140 = vst.msk [vmem:[#allocation2 + $0x58] sm:$0x3] (!%p2657_p12), %vm2116_vm6, %v3344_v15 }
 0x669 PF: > { %v4108_v10 = vld [vmem:[#allocation2 + $0x10] sm:$0xff]  ;;  %v2144_v14 = vld [vmem:[#allocation2 + $0x18] sm:$0x3]  ;;  %v4110_v3 = vld [vmem:[#allocation2 + $0x20] sm:$0xff]  ;;  %vm2174_vm7 = vcmask 1045504   ;;  %vm2161_vm8 = vcmask 1046528  }
 0x66a   : > { %v2146_v21 = vld [vmem:[#allocation2 + $0x28] sm:$0x3]  ;;  %v2178_v13 = vrot.slane %v4108_v10, 2  ;;  %v2179_v26 = vrot.slane %v2144_v14, 2  ;;  %v2181_v27 = vrot.slane %v4110_v3, 2  ;;  %v4114_v30 = vld [vmem:[#allocation2] sm:$0xff]  ;;  %v3130_v55 = vpack.i.bf16 %v4110_v3, %v4108_v10 }
 0x66b   : > { %v2182_v19 = vrot.slane %v2146_v21, 2  ;;  %v2142_v33 = vld [vmem:[#allocation2 + $0x8] sm:$0x3]  ;;  %v2175_v34 = vrot.slane %v4114_v30, 2  ;;  %v2165_v47 = vrot.slane %v4108_v10, 1  ;;  %v2166_v2 = vrot.slane %v2144_v14, 1 }
 0x66c   : > { %v4119_v52 = vsel %vm2174_vm7, %v2178_v13, %v2179_v26  ;;  %v2176_v6 = vrot.slane %v2142_v33, 2  ;;  %v2168_v41 = vrot.slane %v4110_v3, 1  ;;  %v4122_v25 = vld [vmem:[#allocation2 + $0x30] sm:$0xff]  ;;  %v2169_v46 = vrot.slane %v2146_v21, 1  ;;  %v2148_v5 = vld [vmem:[#allocation2 + $0x38] sm:$0x3] }
 0x66d   : > { %v2162_v29 = vrot.slane %v4114_v30, 1  ;;  %v2163_v28 = vrot.slane %v2142_v33, 1  ;;  %v2167_v37 = vsel %vm2161_vm8, %v2165_v47, %v2166_v2  ;;  %v2184_v53 = vrot.slane %v4122_v25, 2  ;;  %v2149_v18 = vld [vmem:[#allocation2 + $0x40] sm:$0xff]  ;;  %v2150_v0 = vld [vmem:[#allocation2 + $0x48] sm:$0x3] }
 0x66e   : > { %v2177_v50 = vsel %vm2174_vm7, %v2175_v34, %v2176_v6  ;;  %v2183_v12 = vsel %vm2174_vm7, %v2181_v27, %v2182_v19  ;;  %v2185_v44 = vrot.slane %v2148_v5, 2  ;;  %v2170_v45 = vsel %vm2161_vm8, %v2168_v41, %v2169_v46  ;;  %s3345_s29 = smov 8   ;;  %s3346_s4 = smov 4   ;;  %v2151_v31 = vld [vmem:[#allocation2 + $0x50] sm:$0xff]  ;;  %v2152_v24 = vld [vmem:[#allocation2 + $0x58] sm:$0x3] }
 0x66f   : > { %v3135_v40 = vpack.i.bf16 %v4119_v52, %v2177_v50  ;;  %v2164_v42 = vsel %vm2161_vm8, %v2162_v29, %v2163_v28  ;;  %v2171_v48 = vrot.slane %v4122_v25, 1  ;;  %v2172_v32 = vrot.slane %v2148_v5, 1  ;;  %s3347_s6 = smov 12   ;;  %s4326_s10 = sld [smem:[#allocation21_spill]] }
 0x670   : > { %v3120_v8 = vpack.i.bf16 %v2167_v37, %v2164_v42  ;;  %v2186_v38 = vsel %vm2174_vm7, %v2184_v53, %v2185_v44  ;;  %v2189_v11 = vrot.slane %v2149_v18, 1  ;;  %v2190_v49 = vrot.slane %v2150_v0, 1  ;;  %s3348_s24 = smov 16   ;;  %s3349_s26 = smov 20  }
 0x671   : > { %3136 = vrot.lane.b32.xlu1 %v3135_v40, %s3345_s29  ;;  %v3140_v20 = vpack.i.bf16 %v2186_v38, %v2183_v12  ;;  %v2173_v16 = vsel %vm2161_vm8, %v2171_v48, %v2172_v32  ;;  %v3145_v36 = vpack.i.bf16 %v2149_v18, %v4122_v25  ;;  %v2192_v9 = vrot.slane %v2149_v18, 2  ;;  %s3350_s8 = smov 24   ;;  %s3351_s30 = smov 28  }
 0x672   : > { %3121 = vrot.lane.b32.xlu0 %v3120_v8, %s3346_s4  ;;  %v3125_v23 = vpack.i.bf16 %v2173_v16, %v2170_v45  ;;  %v2191_v57 = vsel %vm2161_vm8, %v2189_v11, %v2190_v49  ;;  %v2193_v51 = vrot.slane %v2150_v0, 2  ;;  %v3150_v22 = vpack.i.bf16 %v2170_v45, %v2167_v37  ;;  %s4328_s15 = sld [smem:[#allocation10_spill]]  ;;  %s3353_s9 = smov [#allocation6]  }
 0x673   : > { %v3155_v35 = vpack.i.bf16 %v2191_v57, %v2173_v16  ;;  %v3160_v43 = vpack.i.bf16 %v2183_v12, %v4119_v52  ;;  %v2197_v7 = vrot.slane %v2151_v31, 1  ;;  %v2198_v59 = vrot.slane %v2152_v24, 1  ;;  %s3207_s20 = sshll.u32 %s3353_s9, 4  ;;  %s3208_s20 = int_to_ptr.vmem [resolvable:$false] %s3207_s20 }
 0x674   : > { %v2194_v61 = vsel %vm2174_vm7, %v2192_v9, %v2193_v51  ;;  %v3175_v60 = vpack.i.bf16 %v2151_v31, %v2149_v18  ;;  %v2200_v62 = vrot.slane %v2151_v31, 2  ;;  %v3170_v58 = vpack.i.bf16 %v4122_v25, %v4110_v3 }
 0x675   : > { %3141 = vrot.lane.b32.xlu1 %v3140_v20, %s3345_s29  ;;  %v3200_v39 = vld [vmem:[%s4326_s10] sm:$0xff]   ;;  %v3165_v54 = vpack.i.bf16 %v2194_v61, %v2186_v38  ;;  %v3201_v4 = vld [vmem:[%s4326_s10 + $0x8] sm:$0xff]   ;;  %v3202_v56 = vld [vmem:[%s4326_s10 + $0x10] ss:$0 sps:$4 sm:$0x33]   ;;  %v2199_v63 = vsel %vm2161_vm8, %v2197_v7, %v2198_v59  ;;  %v2201_v1 = vrot.slane %v2152_v24, 2 }
 0x676   : > { %3126 = vrot.lane.b32.xlu0 %v3125_v23, %s3346_s4  ;;  %2837 = vmatprep.subr.bf16.mxu1 %v3200_v39  ;;  %v2374_v17 = vsel %vm751_vm0, %v3202_v56, 0  ;;  %v3185_v15 = vpack.i.bf16 %v2199_v63, %v2191_v57  ;;  %s3352_s4 = smov 32   ;;  %vm2307_vm9 = vcmask 97280   ;;  %vm2312_vm10 = vcmask 130048  }
 0x677   : > { %2838 = vmatpush3.bf16.msra.mxu1 %v3200_v39  ;;  %v2202_v14 = vsel %vm2174_vm7, %v2200_v62, %v2201_v1  ;;  %vm2317_vm11 = vcmask 162816   ;;  %vm2322_vm12 = vcmask 195584   ;;  %vm2327_vm13 = vcmask 228352  }
 0x678   : > { %2839 = vmatprep.subr.bf16.mxu1 %v3201_v4  ;;  %v3195_v21 = vpack.i.bf16 %v2202_v14, %v2194_v61  ;;  %vm2332_vm14 = vcmask 261120   ;;  %vm2366_vm15 = vcmask 293888  }
 0x679   : > { %3146 = vrot.lane.b32.xlu1 %v3145_v36, %s3347_s6 }
 0x67a   : > { %3131 = vrot.lane.b32.xlu0 %v3130_v55, %s3347_s6  ;;  %s4327_s6 = sld [smem:[#allocation9_spill]] }
 0x67b   : > { %2840 = vmatpush3.bf16.msra.mxu1 %v3201_v4 }
 0x67c   : > { %2891 = vmatprep.subr.msk.bf16.mxu1 %vm751_vm0, %v3202_v56 }
 0x67d   : > { %3156 = vrot.lane.b32.xlu1 %v3155_v35, %s3348_s24 }
 0x67e   : > { %3151 = vrot.lane.b32.xlu0 %v3150_v22, %s3348_s24  ;;  %s2666_s24 = sshll.u32 %s4328_s15, 3 }
 0x67f   : > { %2842 = vmatpush3.bf16.msra.mxu1 %v2374_v17 }
 0x680   : > { %s2665_s13 = sshll.u32 %s4327_s6, 2  ;;  %s4330_s6 = sld [smem:[#allocation23_spill]] }
 0x681   : > { %3166 = vrot.lane.b32.xlu1 %v3165_v54, %s3349_s26  ;;  %s2446_s18 = sadd.s32 %s2666_s24, %s2665_s13  ;;  %s2434_s13 = scalar_lea.sflag [#allocation7], %s3588_s25 }
 0x682   : > { %3161 = vrot.lane.b32.xlu0 %v3160_v43, %s3349_s26  ;;  %s4329_s26 = sld [smem:[#allocation22_spill]]  ;;  %s2667_s16 = sshll.u32 %s2446_s18, 7 }
 0x685   : > { %3176 = vrot.lane.b32.xlu1 %v3175_v60, %s3350_s8 }
 0x686   : > { %3171 = vrot.lane.b32.xlu0 %v3170_v58, %s3350_s8  ;;  %s2449_s8 = sshll.u32 %s4100_s12, 4  ;;  %s4205_s15 = scalar_lea.hbm %s4330_s6, %s2667_s16  ;;  %s4209_s8 = int_to_ptr.vmem [resolvable:$true] %s2449_s8 }
 0x687   : > { %s3203_s24 = scalar_lea.vmem %s4209_s8, 512  ;;  %p3210_p5 = scmp.lt.s32.totalorder %s4209_s8, %s3208_s20 }
 0x688   : > { %p3204_p13 = scmp.ne.s32.totalorder %s4209_s8, %s3203_s24 }
 0x689   : > { %3186 = vrot.lane.b32.xlu1 %v3185_v15, %s3351_s30 }
 0x68a   : > { %3181 = vrot.lane.b32.xlu0 %v3125_v23, %s3351_s30  ;;  %p3205_p0 = pnand %p3204_p13, %p3542_p6 }
 0x68c   : > { %p3206_p4 = pneg %p3205_p0 }
 0x68d   : > { %3196 = vrot.lane.b32.xlu1 %v3195_v21, %s3352_s4 }
 0x68e   : > { %3191 = vrot.lane.b32.xlu0 %v3140_v20, %s3352_s4 }
 0x6e3   : > { %v3137_v13 = vpop.permute.xlu1 %3136 }
 0x6e4   : > { %v3122_v26 = vpop.permute.xlu0 %3121  ;;  %v3139_v29 = vunpack.i.h.bf16 %v3137_v13  ;;  %v3138_v28 = vunpack.i.l.bf16 %v3137_v13 }
 0x6e5   : > { %v3124_v52 = vunpack.i.h.bf16 %v3122_v26  ;;  %v3123_v6 = vunpack.i.l.bf16 %v3122_v26 }
 0x6e7   : > { %v3142_v27 = vpop.permute.xlu1 %3141  ;;  %v2300_v50 = vsel %vm741_vm2, %v4108_v10, %v3124_v52  ;;  %v2299_v37 = vsel %vm741_vm2, %v4114_v30, %v3123_v6 }
 0x6e8   : > { %v3127_v19 = vpop.permute.xlu0 %3126  ;;  %v3144_v53 = vunpack.i.h.bf16 %v3142_v27  ;;  %v3143_v12 = vunpack.i.l.bf16 %v3142_v27  ;;  %v2304_v10 = vsel %vm909_vm4, %v2300_v50, %v3139_v29  ;;  %v2303_v48 = vsel %vm909_vm4, %v2299_v37, %v3138_v28 }
 0x6e9   : > { %v3129_v41 = vunpack.i.h.bf16 %v3127_v19  ;;  %v3128_v46 = vunpack.i.l.bf16 %v3127_v19 }
 0x6eb   : > { %v3147_v33 = vpop.permute.xlu1 %3146  ;;  %v2302_v42 = vsel %vm741_vm2, %v4122_v25, %v3129_v41  ;;  %v2301_v44 = vsel %vm741_vm2, %v4110_v3, %v3128_v46 }
 0x6ec   : > { %v3132_v34 = vpop.permute.xlu0 %3131  ;;  %v3149_v18 = vunpack.i.h.bf16 %v3147_v33  ;;  %v3148_v0 = vunpack.i.l.bf16 %v3147_v33  ;;  %v2306_v32 = vsel %vm909_vm4, %v2302_v42, %v3144_v53  ;;  %v2305_v25 = vsel %vm909_vm4, %v2301_v44, %v3143_v12  ;;  %v2658_v12 = vld [vmem:[%s4329_s26] ss:$0 sm:$0xff]  ;;  %s3209_s26 = scalar_lea.vmem %s3208_s20, 1024 }
 0x6ed   : > { %v3134_v45 = vunpack.i.h.bf16 %v3132_v34  ;;  %v3133_v8 = vunpack.i.l.bf16 %v3132_v34  ;;  %p3211_p7 = scmp.lt.s32.totalorder %s3209_s26, %s3203_s24 }
 0x6ee   : > { %v2310_v16 = vsel %vm2307_vm9, %v2305_v25, %v3148_v0  ;;  %v2311_v11 = vsel %vm2307_vm9, %v2306_v32, %v3149_v18 }
 0x6ef   : > { %v3157_v47 = vpop.permute.xlu1 %3156  ;;  %v2308_v36 = vsel %vm2307_vm9, %v2303_v48, %v3133_v8  ;;  %v2309_v55 = vsel %vm2307_vm9, %v2304_v10, %v3134_v45  ;;  %p3212_p8 = por %p3211_p7, %p3210_p5 }
 0x6f0   : > { %v3152_v2 = vpop.permute.xlu0 %3151  ;;  %v3159_v38 = vunpack.i.h.bf16 %v3157_v47  ;;  %v3158_v20 = vunpack.i.l.bf16 %v3157_v47 }
 0x6f1   : > { %v3154_v49 = vunpack.i.h.bf16 %v3152_v2  ;;  %v3153_v23 = vunpack.i.l.bf16 %v3152_v2  ;;  %p3213_p2 = pnand %p3212_p8, %p3206_p4 }
 0x6f2   : > { %v2315_v31 = vsel %vm2312_vm10, %v2310_v16, %v3158_v20  ;;  %v2316_v24 = vsel %vm2312_vm10, %v2311_v11, %v3159_v38 }
 0x6f3   : > { %v3167_v5 = vpop.permute.xlu1 %3166  ;;  %v2313_v7 = vsel %vm2312_vm10, %v2308_v36, %v3153_v23  ;;  %v2314_v59 = vsel %vm2312_vm10, %v2309_v55, %v3154_v49 }
 0x6f4   : > { %v3162_v40 = vpop.permute.xlu0 %3161  ;;  %v3169_v57 = vunpack.i.h.bf16 %v3167_v5  ;;  %v3168_v9 = vunpack.i.l.bf16 %v3167_v5 }
 0x6f5   : > { %v3164_v51 = vunpack.i.h.bf16 %v3162_v40  ;;  %v3163_v35 = vunpack.i.l.bf16 %v3162_v40 }
 0x6f6   : > { %v2320_v62 = vsel %vm2317_vm11, %v2315_v31, %v3168_v9  ;;  %v2321_v58 = vsel %vm2317_vm11, %v2316_v24, %v3169_v57 }
 0x6f7   : > { %v3177_v30 = vpop.permute.xlu1 %3176  ;;  %v2318_v17 = vsel %vm2317_vm11, %v2313_v7, %v3163_v35  ;;  %v2319_v15 = vsel %vm2317_vm11, %v2314_v59, %v3164_v51 }
 0x6f8   : > { %v3172_v3 = vpop.permute.xlu0 %3171  ;;  %v3179_v39 = vunpack.i.h.bf16 %v3177_v30  ;;  %v3178_v22 = vunpack.i.l.bf16 %v3177_v30 }
 0x6f9   : > { %v3174_v54 = vunpack.i.h.bf16 %v3172_v3  ;;  %v3173_v4 = vunpack.i.l.bf16 %v3172_v3 }
 0x6fa   : > { %v2325_v14 = vsel %vm2322_vm12, %v2320_v62, %v3178_v22  ;;  %v2326_v21 = vsel %vm2322_vm12, %v2321_v58, %v3179_v39 }
 0x6fb   : > { %v3187_v61 = vpop.permute.xlu1 %3186  ;;  %v2323_v26 = vsel %vm2322_vm12, %v2318_v17, %v3173_v4  ;;  %v2324_v27 = vsel %vm2322_vm12, %v2319_v15, %v3174_v54 }
 0x6fc   : > { %v3182_v43 = vpop.permute.xlu0 %3181  ;;  %v3189_v60 = vunpack.i.h.bf16 %v3187_v61  ;;  %v3188_v56 = vunpack.i.l.bf16 %v3187_v61 }
 0x6fd   : > { %v3184_v63 = vunpack.i.h.bf16 %v3182_v43  ;;  %v3183_v1 = vunpack.i.l.bf16 %v3182_v43 }
 0x6fe   : > { %v2330_v47 = vsel %vm2327_vm13, %v2325_v14, %v3188_v56  ;;  %v2331_v52 = vsel %vm2327_vm13, %v2326_v21, %v3189_v60 }
 0x6ff   : > { %v3197_v13 = vpop.permute.xlu1 %3196  ;;  %v2328_v29 = vsel %vm2327_vm13, %v2323_v26, %v3183_v1  ;;  %v2329_v28 = vsel %vm2327_vm13, %v2324_v27, %v3184_v63 }
 0x700   : > { %v3199_v19 = vunpack.i.h.bf16 %v3197_v13  ;;  %v3198_v33 = vunpack.i.l.bf16 %v3197_v13  ;;  %v3192_v34 = vpop.permute.xlu0 %3191 }
 0x701   : > { %v3194_v6 = vunpack.i.h.bf16 %v3192_v34  ;;  %v3193_v2 = vunpack.i.l.bf16 %v3192_v34 }
 0x702   : > { %v2335_v41 = vsel %vm2332_vm14, %v2330_v47, %v3198_v33  ;;  %v2336_v46 = vsel %vm2332_vm14, %v2331_v52, %v3199_v19 }
 0x703   : > { %v2338_v5 = vpack.c.bf16 %v2336_v46, %v2335_v41  ;;  %v2333_v50 = vsel %vm2332_vm14, %v2328_v29, %v3193_v2  ;;  %v2334_v37 = vsel %vm2332_vm14, %v2329_v28, %v3194_v6 }
 0x704   : > { %v2337_v53 = vpack.c.bf16 %v2334_v37, %v2333_v50 }
 0x706   : > { %2843 = vmatprep.mubr.msk.bf16.mxu1 %vm2366_vm15, %v2337_v53 }
 0x707   : > { %2844 = vmatmul.mubr.msk.bf16.vlgmr.msra.gmra.mrb[52].mxu1 %vm2366_vm15, %v2338_v5 }
 0x7da   : > { %v2845_v40 = vpop.f32.mrb[52].mxu1 }
 0x7db   : > { %v2419_v42 = vadd.f32 %v2845_v40, %v2658_v12  ;;  %v2410_v44 = vpop.f32.mrb[53].mxu1 }
 0x7dc   : > { %v2411_v18 = vadd.f32 %v2658_v12, %v2410_v44  ;;  %v2846_v0 = vpop.f32.mrb[54].mxu1 }
 0x7dd   : > { %v2427_v45 = vmax.f32 %v2419_v42, 0.0  ;;  %v2422_v8 = vadd.f32 %v2846_v0, %v2658_v12  ;;  %v2413_v10 = vpop.f32.mrb[55].mxu1 }
 0x7de   : > { %v2425_v48 = vmax.f32 %v2411_v18, 0.0  ;;  %v2414_v30 = vadd.f32 %v2658_v12, %v2413_v10 }
 0x7df   : > { %2431 = vst.msk [vmem:[%s4100_s12 + $0x10] sm:$0xff] %vm909_vm4, %v2427_v45  ;;  %v2428_v32 = vmax.f32 %v2422_v8, 0.0 }
 0x7e0   : > { %2429 = vst.msk [vmem:[%s4100_s12] sm:$0xff] %vm909_vm4, %v2425_v48  ;;  %v2426_v25 = vmax.f32 %v2414_v30, 0.0 }
 0x7e1   : > { %2432 = vst.msk [vmem:[%s4100_s12 + $0x18] sm:$0xff] %vm909_vm4, %v2428_v32 }
 0x7e2   : > { %2430 = vst.msk [vmem:[%s4100_s12 + $0x8] sm:$0xff] %vm909_vm4, %v2426_v25 }
 0x7e3   : > { %3216 = shalt.err (!%p3213_p2)
}
 0x7e4   : > { %s3217_s12 = scalar_lea.hbm %s4205_s15, 512  ;;  %s3221_s30 = scalar_lea.hbm %s4330_s6, 2048 }
 0x7e5   : > { %p3218_p1 = scmp.ne.s32.totalorder %s4205_s15, %s3217_s12  ;;  %p3222_p11 = scmp.lt.u32.totalorder %s4205_s15, %s4330_s6 }
 0x7e6   : > { %p3223_p12 = scmp.lt.u32.totalorder %s3221_s30, %s3217_s12  ;;  %p3225_p0 = scmp.lt.u32.totalorder %s3217_s12, %s4205_s15 }
 0x7e7   : > { %p3219_p3 = pnand %p3218_p1, %p3542_p6 }
 0x7e8   : > { %p3224_p13 = por %p3223_p12, %p3222_p11 }
 0x7e9   : > { %p3220_p9 = pneg %p3219_p3 }
 0x7ea   : > { %p3226_p4 = por %p3225_p0, %p3224_p13 }
 0x7ec   : > { %p3227_p5 = pnand %p3226_p4, %p3220_p9 }
 0x7ee   : > { %3230 = shalt.err (!%p3227_p5)
}
 0x7ef   : > { %s3354_s24 = smov 128  }
 0x7f0   : > { %2892 = dma.vmem_to_hbm [thread:$0]  (%p3542_p6), %s4209_s8, 512, %s4205_s15, %s2434_s13, %s3354_s24, %s3354_s24, %s3345_s29  }
 0x7f1 PF: > { %p2898_p7 = scmp.ge.s32.totalorder %s3329_s28, 2  ;;  %s2464_s26 = sand.u32 1, %s3285_s17  }
 0x7f2   : > { %s2465_s12 = scalar_lea.sflag [#allocation7], %s2464_s26 }
 0x7f3   : > { %p2895_p8 = pnand %p2898_p7, %p3553_p10 }
 0x7f5   : > { %3280 = dma.done.wait (!%p2895_p8), %s2465_s12, 512  }
 0x7f6   : > { %3282 = vsyncadd (!%p2895_p8), %s2465_s12, 4294966784  ;;  %s24_s28 = sadd.s32 1, %s3329_s28   ;;  %s4332_s11 = sld [smem:[#allocation16_spill]] }
 0x7f7   : > { %p21_p2 = scmp.ge.s32.totalorder %s24_s28, 6   ;;  %s4333_s25 = sld [smem:[#allocation15_spill]] }
 0x7f8   : > { %s4334_s29 = sld [smem:[#allocation14_spill]]  ;;  %s4335_s24 = sld [smem:[#allocation11_spill]] }
 0x7f9   : > { %s4336_s26 = sld [smem:[#allocation12_spill]]  ;;  %s4337_s8 = sld [smem:[#allocation13_spill]] }
 0x7fa   : > { %s4338_s17 = smov %s3305_s22  ;;  %s4339_s18 = smov %s3293_s19 }
 0x7fb   : > { %s4341_s20 = smov %s3301_s21  ;;  %s4343_s22 = smov %s3309_s23 }
 0x7fc   : > { %s4340_s19 = smov %s4332_s11  ;;  %23 = sbr.rel (!%p21_p2) target bundleno = 14 (0xe), region = 261 }
 0x7fd   : > { %s4342_s21 = smov %s4333_s25  ;;  %s4345_s25 = smov %s3325_s27 }
 0x7fe   : > { %s4344_s23 = smov %s4334_s29 }
 0x7ff   : > { %s4346_s27 = smov %s4337_s8 }
 0x803   :  { %2470 = vsyncpa [#allocation7], 1 }
 0x804   :  { %2472 = vsyncpa [#allocation7 + $0x1], 1 }

</bundles_post_ra>
